<compile_context>
chip_gen: v7x
topology: tpu7x:2x2x1
jax: 0.10.0
libtpu: 0.0.40
codegen_flags: <defaults>
</compile_context>

<pallas_src>
import functools

import jax
import jax.numpy as jnp
from jax import lax
from jax.experimental import pallas as pl
from jax.experimental.pallas import tpu as pltpu

SCALE = 0.7071067811865476  # sqrt(0.5), matches torch.sqrt(FloatTensor([0.5]))


def _decoder_layer_kernel(kernel_size,
                          emb_ref,      # (Bt, T, E)  embedded (tok+pos), bf16
                          encc_ref,     # (Bt, S, E)  encoder_conved, bf16
                          encz_ref,     # (Bt, S, E)  encoder_combined, bf16
                          wcv_ref,      # (1, k, H, H) conv weight, GLU value half, bf16
                          wcg_ref,      # (1, k, H, H) conv weight, GLU gate half, bf16
                          bcv_ref,      # (1, 1, H)    conv bias, value half, f32
                          bcg_ref,      # (1, 1, H)    conv bias, gate half, f32
                          w_e2h0_ref,   # (E, H) Decoder.embedd2hidden, bf16
                          b_e2h0_ref,   # (1, H) f32
                          w_h2e_a_ref,  # (H, E) Attention.hidden2embed, bf16
                          b_h2e_a_ref,  # (1, E) f32
                          w_e2h_a_ref,  # (E, H) Attention.embed2hidden, bf16
                          b_e2h_a_ref,  # (1, H) f32
                          x_out_ref,    # (Bt, T, H)  final conv_input, f32
                          attn_ref,     # (Bt, T, S)  last-layer attention, bf16
                          x_sc):        # (Bt*T, H)   f32 carry across the layer axis
    Bt, T, E = emb_ref.shape
    S = encc_ref.shape[1]
    H = x_out_ref.shape[2]
    R = Bt * T
    k = kernel_size
    bf16 = jnp.bfloat16
    li = pl.program_id(1)
    last_layer = pl.num_programs(1) - 1

    emb_bf = emb_ref[...].reshape(R, E)                     # (R, E) bf16

    # conv_input = embedd2hidden(dropout(embedded)); dropout == identity.
    # The residual stream lives in x_sc across the "arbitrary" layer axis.
    @pl.when(li == 0)
    def _init():
        x_sc[...] = (jnp.dot(emb_bf, w_e2h0_ref[...],
                             preferred_element_type=jnp.float32)
                     + b_e2h0_ref[...])

    x = x_sc[...]                                           # (R, H) f32

    # ---- causal Conv1d (H -> 2H), GLU halves split ---------------------------
    # out[t] = bias + sum_d x[t-d] @ w[k-1-d]  (zero when t-d < 0; PAD_token==0
    # so zero padding matches the PyTorch module).  Shifts use sublane rolls +
    # a causal row mask so they never cross a batch-element boundary.
    t_idx = lax.broadcasted_iota(jnp.int32, (R, 1), 0) % T
    x_bf = x.astype(bf16)
    acc_v = jnp.dot(x_bf, wcv_ref[0, k - 1], preferred_element_type=jnp.float32)
    acc_g = jnp.dot(x_bf, wcg_ref[0, k - 1], preferred_element_type=jnp.float32)
    for d in range(1, k):
        # NOTE: the roll stays on the 32-bit copy (packed-dtype sublane rotates
        # are not portable across Mosaic versions).  A v5e-oriented variant
        # could lane-concat the k masked shifts and do a single
        # (R, k*H) @ (k*H, H) matmul per GLU half.
        x_s = pltpu.roll(x, shift=d, axis=0)
        x_s = jnp.where(t_idx >= d, x_s, 0.0).astype(bf16)
        acc_v = acc_v + jnp.dot(x_s, wcv_ref[0, k - 1 - d],
                                preferred_element_type=jnp.float32)
        acc_g = acc_g + jnp.dot(x_s, wcg_ref[0, k - 1 - d],
                                preferred_element_type=jnp.float32)
    conved = (acc_v + bcv_ref[0]) * jax.nn.sigmoid(acc_g + bcg_ref[0])  # (R, H)

    # ---- Attention -----------------------------------------------------------
    conved_emb = (jnp.dot(conved.astype(bf16), w_h2e_a_ref[...],
                          preferred_element_type=jnp.float32)
                  + b_h2e_a_ref[...])
    combined = (conved_emb + emb_bf.astype(jnp.float32)) * SCALE        # (R, E)
    comb_b = combined.reshape(Bt, T, E).astype(bf16)
    energy = jnp.einsum("bte,bse->bts", comb_b, encc_ref[...],
                        preferred_element_type=jnp.float32)             # (Bt,T,S)
    energy = energy - jnp.max(energy, axis=-1, keepdims=True)
    p = jnp.exp(energy)
    attn = p * pl.reciprocal(jnp.sum(p, axis=-1, keepdims=True), approx=True)
    attended = jnp.einsum("bts,bse->bte", attn.astype(bf16), encz_ref[...],
                          preferred_element_type=jnp.float32)           # (Bt,T,E)
    attended_h = (jnp.dot(attended.reshape(R, E).astype(bf16), w_e2h_a_ref[...],
                          preferred_element_type=jnp.float32)
                  + b_e2h_a_ref[...])
    attended_combined = (conved + attended_h) * SCALE

    # ---- residual: conv_input = (attended_combined + conv_input) * scale -----
    x_new = (attended_combined + x) * SCALE
    x_sc[...] = x_new

    # Output blocks are resident across the layer axis (constant block index):
    # write only the last layer's values (lane-dense, attention in bf16).
    @pl.when(li == last_layer)
    def _finalize():
        x_out_ref[...] = x_new.reshape(Bt, T, H)
        attn_ref[...] = attn.astype(attn_ref.dtype)


def _vmem_bytes_estimate(block_b, T, S, E, H, kernel_size):
    """Rough per-grid-step VMEM footprint (bytes) used for block sizing."""
    bf, f32 = 2, 4
    r = block_b * T
    acts = 2 * (block_b * T * E + 2 * block_b * S * E) * bf      # dbl-buffered bf16 inputs
    convw = 2 * (2 * kernel_size * H * H * bf + 2 * H * f32)     # dbl-buffered per-layer conv
    constw = 3 * E * H * bf + (2 * H + E) * f32                  # single-buffered fixed weights
    outs = 2 * (block_b * T * H * f32 + block_b * T * S * bf)    # dbl-buffered outputs
    carry = r * H * f32                                          # residual-stream scratch
    temps = r * (2 * H + 2 * E + 2 * S) * f32                    # in-flight temporaries
    return acts + convw + constw + outs + carry + temps


def _const_spec(shape):
    """BlockSpec for a weight block that is identical at every grid step.

    Requests single buffering (double-buffering a never-changing block only
    doubles its VMEM footprint); falls back to the default pipelining if this
    jax version does not accept pipeline_mode / Buffered(1).
    """
    n = len(shape)
    idx = lambda b, li: (0,) * n
    try:
        return pl.BlockSpec(shape, idx, pipeline_mode=pl.Buffered(1))
    except Exception:
        return pl.BlockSpec(shape, idx)


def decoder_forward(target, enc_conved, enc_combined, params, kernel_size=3,
                    block_b=None):
    B, T = target.shape
    S = enc_conved.shape[1]
    E = params["tok_emb"].shape[1]
    H = params["w_e2h0"].shape[1]
    L = params["wconv"].shape[0]
    bf16 = jnp.bfloat16

    # glue: embedding gathers (dropout = identity); kernel inputs go in bf16
    tok = params["tok_emb"][target]                      # (B, T, E)
    pos = params["pos_emb"][jnp.arange(T)][None]         # (1, T, E)
    embedded = (tok + pos).astype(bf16)                  # (B, T, E) bf16
    encc = enc_conved.astype(bf16)                       # (B, S, E) bf16
    encz = enc_combined.astype(bf16)                     # (B, S, E) bf16

    # batch-block heuristic: target ~512 matmul rows per grid step (fills the
    # 256-wide MXU on v6e/v7x), keep >= 2 "parallel" steps for megacore, cap
    # the per-step VMEM footprint well under v7x's 64 MiB per-core VMEM.
    if block_b is None:
        block_b = max(1, min(B, 512 // max(T, 1)))
        if B >= 2:
            block_b = min(block_b, max(1, B // 2))
        while B % block_b:
            block_b -= 1
        while (block_b > 1 and
               _vmem_bytes_estimate(block_b, T, S, E, H, kernel_size)
               > 40 * 1024 * 1024):
            block_b -= 1
            while B % block_b:
                block_b -= 1
    nb = B // block_b

    vmem_limit = int(min(64 * 1024 * 1024,
                         max(16 * 1024 * 1024,
                             2 * _vmem_bytes_estimate(block_b, T, S, E, H,
                                                      kernel_size))))

    # split the GLU conv weight/bias into value/gate halves (no lane slicing of
    # a 2H-wide accumulator in-kernel); cast MXU weights to bf16.
    wconv = params["wconv"]                              # (L, k, H, 2H)
    wcv = wconv[..., :H].astype(bf16)
    wcg = wconv[..., H:].astype(bf16)
    bconv = params["bconv"].astype(jnp.float32)          # (L, 1, 2H)
    bcv = bconv[..., :H]
    bcg = bconv[..., H:]
    w_e2h0 = params["w_e2h0"].astype(bf16)
    w_h2e_a = params["w_h2e_a"].astype(bf16)
    w_e2h_a = params["w_e2h_a"].astype(bf16)

    in_specs = [
        pl.BlockSpec((block_b, T, E), lambda b, li: (b, 0, 0)),   # embedded
        pl.BlockSpec((block_b, S, E), lambda b, li: (b, 0, 0)),   # encoder_conved
        pl.BlockSpec((block_b, S, E), lambda b, li: (b, 0, 0)),   # encoder_combined
        pl.BlockSpec((1, kernel_size, H, H),
                     lambda b, li: (li, 0, 0, 0)),                # conv w (value), streamed
        pl.BlockSpec((1, kernel_size, H, H),
                     lambda b, li: (li, 0, 0, 0)),                # conv w (gate), streamed
        pl.BlockSpec((1, 1, H), lambda b, li: (li, 0, 0)),        # conv b (value)
        pl.BlockSpec((1, 1, H), lambda b, li: (li, 0, 0)),        # conv b (gate)
        _const_spec((E, H)), _const_spec((1, H)),                 # embedd2hidden
        _const_spec((H, E)), _const_spec((1, E)),                 # attention.hidden2embed
        _const_spec((E, H)), _const_spec((1, H)),                 # attention.embed2hidden
    ]
    out_specs = [
        pl.BlockSpec((block_b, T, H), lambda b, li: (b, 0, 0)),   # final conv_input (f32)
        pl.BlockSpec((block_b, T, S), lambda b, li: (b, 0, 0)),   # attention (T, S), bf16
    ]
    out_shape = [
        jax.ShapeDtypeStruct((B, T, H), jnp.float32),
        jax.ShapeDtypeStruct((B, T, S), bf16),
    ]

    kernel = functools.partial(_decoder_layer_kernel, kernel_size)
    x_final, attn_ts = pl.pallas_call(
        kernel,
        grid_spec=pltpu.PrefetchScalarGridSpec(
            num_scalar_prefetch=0,
            grid=(nb, L),
            in_specs=in_specs,
            out_specs=out_specs,
            scratch_shapes=[pltpu.VMEM((block_b * T, H), jnp.float32)],
        ),
        out_shape=out_shape,
        compiler_params=pltpu.CompilerParams(
            dimension_semantics=("parallel", "arbitrary"),
            vmem_limit_bytes=vmem_limit),
    )(embedded, encc, encz,
      wcv, wcg, bcv, bcg,
      w_e2h0, params["b_e2h0"],
      w_h2e_a, params["b_h2e_a"],
      w_e2h_a, params["b_e2h_a"])

    # hidden2embedd + vocab projection hoisted out of the kernel: XLA tiles the
    # (E, V) GEMM fine, and keeping it in-kernel would pin the f32 (Bt, T, V)
    # output block + (E, V) weight in VMEM (blows the v7x 64 MiB budget).
    final_e = (jnp.dot(x_final, params["w_h2e_f"], precision="highest")
               + params["b_h2e_f"])
    logits = (jnp.dot(final_e, params["w_out"], precision="highest")
              + params["b_out"])
    # the kernel writes attention lane-dense as (B, T, S); PyTorch returns (B, S, T)
    attention = jnp.swapaxes(attn_ts.astype(jnp.float32), 1, 2)
    return logits, attention


def decoder_reference(target, enc_conved, enc_combined, params, kernel_size=3):
    """Pure-JAX reference mirroring the PyTorch forward (dropout = identity)."""
    B, T = target.shape
    tok = params["tok_emb"][target]
    pos = params["pos_emb"][jnp.arange(T)][None]
    embedded = tok + pos                                  # (B, T, E)
    x = embedded @ params["w_e2h0"] + params["b_e2h0"]    # (B, T, H)
    H = x.shape[-1]
    L = params["wconv"].shape[0]
    scale = jnp.float32(SCALE)
    attn = None
    for li in range(L):
        xpad = jnp.concatenate(
            [jnp.zeros((B, kernel_size - 1, H), jnp.float32), x], axis=1)
        wconv = params["wconv"][li]                       # (k, H, 2H)
        conv = sum(jnp.einsum("bth,ho->bto", xpad[:, j:j + T], wconv[j],
                              precision="highest")
                   for j in range(kernel_size)) + params["bconv"][li]
        conved = conv[..., :H] * jax.nn.sigmoid(conv[..., H:])
        conved_emb = conved @ params["w_h2e_a"] + params["b_h2e_a"]
        combined = (conved_emb + embedded) * scale
        energy = jnp.einsum("bte,bse->bts", combined, enc_conved,
                            precision="highest")
        attn = jax.nn.softmax(energy, axis=-1)
        attended = jnp.einsum("bts,bse->bte", attn, enc_combined,
                              precision="highest")
        attended_h = attended @ params["w_e2h_a"] + params["b_e2h_a"]
        attended_combined = (conved + attended_h) * scale
        x = (attended_combined + x) * scale
    final_e = x @ params["w_h2e_f"] + params["b_h2e_f"]
    logits = final_e @ params["w_out"] + params["b_out"]
    return logits, jnp.swapaxes(attn, 1, 2)


if __name__ == "__main__":
    # small shapes consistent with the module
    B, T, S = 2, 8, 8          # batch, target seq, source seq
    E, H, V = 32, 32, 128      # embedding_dim, hidden_dim, vocab_size
    L, K, MAX_LEN = 2, 3, 50   # num_layers, kernel_size, max_len

    key = jax.random.PRNGKey(0)
    ks = jax.random.split(key, 18)
    init = lambda k, shape: jax.random.normal(k, shape, jnp.float32) * 0.05

    params = {
        "tok_emb": init(ks[0], (V, E)),
        "pos_emb": init(ks[1], (MAX_LEN, E)),
        "w_e2h0": init(ks[2], (E, H)), "b_e2h0": init(ks[3], (1, H)),
        "w_h2e_a": init(ks[4], (H, E)), "b_h2e_a": init(ks[5], (1, E)),
        "w_e2h_a": init(ks[6], (E, H)), "b_e2h_a": init(ks[7], (1, H)),
        "w_h2e_f": init(ks[8], (H, E)), "b_h2e_f": init(ks[9], (1, E)),
        "w_out": init(ks[10], (E, V)), "b_out": init(ks[11], (1, V)),
        "wconv": init(ks[12], (L, K, H, 2 * H)),
        "bconv": init(ks[13], (L, 1, 2 * H)),
    }

    target = jax.random.randint(ks[14], (B, T), 0, V)
    enc_conved = init(ks[15], (B, S, E)) * 4.0
    enc_combined = init(ks[16], (B, S, E)) * 3.0

    logits, attention = decoder_forward(target, enc_conved, enc_combined,
                                        params, kernel_size=K)
    jax.block_until_ready((logits, attention))

    with jax.default_matmul_precision("highest"):
        ref_logits, ref_attention = decoder_reference(
            target, enc_conved, enc_combined, params, kernel_size=K)
    jax.block_until_ready((ref_logits, ref_attention))

    assert logits.shape == (B, T, V) and attention.shape == (B, S, T)
    # bf16 MXU operands / bf16 attention writeback (f32 accumulation) ->
    # slightly loosened tolerances vs the f32 reference
    assert jnp.allclose(logits, ref_logits, atol=5e-3, rtol=5e-2), "logits mismatch"
    assert jnp.allclose(attention, ref_attention, atol=5e-3, rtol=5e-2), "attn mismatch"

    # TODO(synk): dropout is treated as identity (eval mode); train-mode dropout
    # would need pltpu.prng_* inside the kernel.
    print("KERNEL_OK")
</pallas_src>

<mosaic_0001>
module attributes {stable_mosaic.version = 11 : i64} {
  func.func @_decoder_layer_kernel(%arg0: i32, %arg1: i32, %arg2: memref<1x8x32xbf16, #tpu.memory_space<vmem>>, %arg3: memref<1x8x32xbf16, #tpu.memory_space<vmem>>, %arg4: memref<1x8x32xbf16, #tpu.memory_space<vmem>>, %arg5: memref<1x3x32x32xbf16, #tpu.memory_space<vmem>>, %arg6: memref<1x3x32x32xbf16, #tpu.memory_space<vmem>>, %arg7: memref<1x1x32xf32, #tpu.memory_space<vmem>>, %arg8: memref<1x1x32xf32, #tpu.memory_space<vmem>>, %arg9: memref<32x32xbf16, #tpu.memory_space<vmem>>, %arg10: memref<1x32xf32, #tpu.memory_space<vmem>>, %arg11: memref<32x32xbf16, #tpu.memory_space<vmem>>, %arg12: memref<1x32xf32, #tpu.memory_space<vmem>>, %arg13: memref<32x32xbf16, #tpu.memory_space<vmem>>, %arg14: memref<1x32xf32, #tpu.memory_space<vmem>>, %arg15: memref<1x8x32xf32, #tpu.memory_space<vmem>>, %arg16: memref<1x8x8xbf16, #tpu.memory_space<vmem>>, %arg17: memref<8x32xf32, #tpu.memory_space<vmem>>) attributes {dimension_semantics = [#tpu.dimension_semantics<parallel>, #tpu.dimension_semantics<arbitrary>], iteration_bounds = array<i64: 2, 2>, scalar_prefetch = 0 : i64, scratch_operands = 1 : i64, tpu.core_type = #tpu.core_type<tc>, window_params = [{transform_indices = @transform_0, window_bounds = array<i64: 1, 8, 32>}, {transform_indices = @transform_1, window_bounds = array<i64: 1, 8, 32>}, {transform_indices = @transform_2, window_bounds = array<i64: 1, 8, 32>}, {transform_indices = @transform_3, window_bounds = array<i64: 1, 3, 32, 32>}, {transform_indices = @transform_4, window_bounds = array<i64: 1, 3, 32, 32>}, {transform_indices = @transform_5, window_bounds = array<i64: 1, 1, 32>}, {transform_indices = @transform_6, window_bounds = array<i64: 1, 1, 32>}, {pipeline_mode = #tpu.pipeline_mode<synchronous>, transform_indices = @transform_7, window_bounds = array<i64: 32, 32>}, {pipeline_mode = #tpu.pipeline_mode<synchronous>, transform_indices = @transform_8, window_bounds = array<i64: 1, 32>}, {pipeline_mode = #tpu.pipeline_mode<synchronous>, transform_indices = @transform_9, window_bounds = array<i64: 32, 32>}, {pipeline_mode = #tpu.pipeline_mode<synchronous>, transform_indices = @transform_10, window_bounds = array<i64: 1, 32>}, {pipeline_mode = #tpu.pipeline_mode<synchronous>, transform_indices = @transform_11, window_bounds = array<i64: 32, 32>}, {pipeline_mode = #tpu.pipeline_mode<synchronous>, transform_indices = @transform_12, window_bounds = array<i64: 1, 32>}, {transform_indices = @transform_13, window_bounds = array<i64: 1, 8, 32>}, {transform_indices = @transform_14, window_bounds = array<i64: 1, 8, 8>}]} {
    %c0 = arith.constant 0 : index
    %c0_0 = arith.constant 0 : index
    %c0_1 = arith.constant 0 : index
    %0 = vector.load %arg2[%c0, %c0_0, %c0_1] : memref<1x8x32xbf16, #tpu.memory_space<vmem>>, vector<1x8x32xbf16>
    %1 = vector.shape_cast %0 : vector<1x8x32xbf16> to vector<8x32xbf16>
    %c0_i32 = arith.constant 0 : i32
    %2 = arith.cmpi eq, %arg1, %c0_i32 : i32
    %3 = arith.extui %2 : i1 to i32
    %c0_i32_2 = arith.constant 0 : i32
    %4 = arith.cmpi ne, %3, %c0_i32_2 : i32
    scf.if %4 {
      %c0_75 = arith.constant 0 : index
      %c0_76 = arith.constant 0 : index
      %120 = vector.load %arg9[%c0_75, %c0_76] : memref<32x32xbf16, #tpu.memory_space<vmem>>, vector<32x32xbf16>
      %cst_77 = arith.constant dense<0.000000e+00> : vector<8x32xf32>
      %121 = tpu.matmul %1, %120, %cst_77 {dimension_numbers = #tpu.dot_dimension_numbers<[1], [0], [0], [1], [0, 0, 1, 1], [], []>} : vector<8x32xbf16>, vector<32x32xbf16>, vector<8x32xf32> -> vector<8x32xf32>
      %c0_78 = arith.constant 0 : index
      %c0_79 = arith.constant 0 : index
      %122 = vector.load %arg10[%c0_78, %c0_79] : memref<1x32xf32, #tpu.memory_space<vmem>>, vector<1x32xf32>
      %123 = vector.broadcast %122 : vector<1x32xf32> to vector<8x32xf32>
      %124 = arith.addf %121, %123 : vector<8x32xf32>
      %c0_80 = arith.constant 0 : index
      %c0_81 = arith.constant 0 : index
      %125 = vector.load %arg17[%c0_80, %c0_81] : memref<8x32xf32, #tpu.memory_space<vmem>>, vector<8x32xf32>
      tpu.vector_store %arg17[%c0_80, %c0_81], %124 {strides = array<i32>} : memref<8x32xf32, #tpu.memory_space<vmem>>, vector<8x32xf32>,
    } else {
    }
    %c0_3 = arith.constant 0 : index
    %c0_4 = arith.constant 0 : index
    %5 = vector.load %arg17[%c0_3, %c0_4] : memref<8x32xf32, #tpu.memory_space<vmem>>, vector<8x32xf32>
    %6 = tpu.iota {dimensions = array<i32: 0>} : vector<8x1xi32>
    %c8_i32 = arith.constant 8 : i32
    %c0_i32_5 = arith.constant 0 : i32
    %7 = arith.cmpi eq, %c8_i32, %c0_i32_5 : i32
    %c1_i32 = arith.constant 1 : i32
    %8 = arith.select %7, %c1_i32, %c8_i32 : i32
    %9 = vector.broadcast %8 : i32 to vector<8x1xi32>
    %10 = arith.remsi %6, %9 : vector<8x1xi32>
    %c0_i32_6 = arith.constant 0 : i32
    %11 = vector.broadcast %c0_i32_6 : i32 to vector<8x1xi32>
    %12 = arith.cmpi ne, %10, %11 : vector<8x1xi32>
    %c0_i32_7 = arith.constant 0 : i32
    %13 = vector.broadcast %c0_i32_7 : i32 to vector<8x1xi32>
    %14 = arith.cmpi slt, %10, %13 : vector<8x1xi32>
    %c0_i32_8 = arith.constant 0 : i32
    %15 = arith.cmpi slt, %8, %c0_i32_8 : i32
    %16 = vector.broadcast %15 : i1 to vector<8x1xi1>
    %17 = vector.broadcast %16 : vector<8x1xi1> to vector<8x1xi1>
    %18 = arith.xori %14, %17 : vector<8x1xi1>
    %19 = arith.andi %18, %12 : vector<8x1xi1>
    %20 = vector.broadcast %8 : i32 to vector<8x1xi32>
    %21 = arith.addi %10, %20 : vector<8x1xi32>
    %22 = arith.select %19, %21, %10 : vector<8x1xi1>, vector<8x1xi32>
    %23 = arith.truncf %5 : vector<8x32xf32> to vector<8x32xbf16>
    %c0_9 = arith.constant 0 : index
    %c2 = arith.constant 2 : index
    %c0_10 = arith.constant 0 : index
    %c0_11 = arith.constant 0 : index
    %24 = vector.load %arg5[%c0_9, %c2, %c0_10, %c0_11] : memref<1x3x32x32xbf16, #tpu.memory_space<vmem>>, vector<1x1x32x32xbf16>
    %25 = vector.shape_cast %24 : vector<1x1x32x32xbf16> to vector<32x32xbf16>
    %cst = arith.constant dense<0.000000e+00> : vector<8x32xf32>
    %26 = tpu.matmul %23, %25, %cst {dimension_numbers = #tpu.dot_dimension_numbers<[1], [0], [0], [1], [0, 0, 1, 1], [], []>} : vector<8x32xbf16>, vector<32x32xbf16>, vector<8x32xf32> -> vector<8x32xf32>
    %c0_12 = arith.constant 0 : index
    %c2_13 = arith.constant 2 : index
    %c0_14 = arith.constant 0 : index
    %c0_15 = arith.constant 0 : index
    %27 = vector.load %arg6[%c0_12, %c2_13, %c0_14, %c0_15] : memref<1x3x32x32xbf16, #tpu.memory_space<vmem>>, vector<1x1x32x32xbf16>
    %28 = vector.shape_cast %27 : vector<1x1x32x32xbf16> to vector<32x32xbf16>
    %cst_16 = arith.constant dense<0.000000e+00> : vector<8x32xf32>
    %29 = tpu.matmul %23, %28, %cst_16 {dimension_numbers = #tpu.dot_dimension_numbers<[1], [0], [0], [1], [0, 0, 1, 1], [], []>} : vector<8x32xbf16>, vector<32x32xbf16>, vector<8x32xf32> -> vector<8x32xf32>
    %c1_i32_17 = arith.constant 1 : i32
    %30 = tpu.dynamic_rotate %5 by %c1_i32_17 dim 0 : vector<8x32xf32>, i32 -> vector<8x32xf32>
    %c1_i32_18 = arith.constant 1 : i32
    %31 = vector.broadcast %c1_i32_18 : i32 to vector<8x1xi32>
    %32 = arith.cmpi sge, %22, %31 : vector<8x1xi32>
    %cst_19 = arith.constant 0.000000e+00 : f32
    %33 = vector.shape_cast %32 : vector<8x1xi1> to vector<8x1xi1>
    %34 = vector.broadcast %33 : vector<8x1xi1> to vector<8x32xi1>
    %35 = vector.broadcast %cst_19 : f32 to vector<8x32xf32>
    %36 = arith.select %34, %30, %35 : vector<8x32xi1>, vector<8x32xf32>
    %37 = arith.truncf %36 : vector<8x32xf32> to vector<8x32xbf16>
    %c0_20 = arith.constant 0 : index
    %c1 = arith.constant 1 : index
    %c0_21 = arith.constant 0 : index
    %c0_22 = arith.constant 0 : index
    %38 = vector.load %arg5[%c0_20, %c1, %c0_21, %c0_22] : memref<1x3x32x32xbf16, #tpu.memory_space<vmem>>, vector<1x1x32x32xbf16>
    %39 = vector.shape_cast %38 : vector<1x1x32x32xbf16> to vector<32x32xbf16>
    %cst_23 = arith.constant dense<0.000000e+00> : vector<8x32xf32>
    %40 = tpu.matmul %37, %39, %cst_23 {dimension_numbers = #tpu.dot_dimension_numbers<[1], [0], [0], [1], [0, 0, 1, 1], [], []>} : vector<8x32xbf16>, vector<32x32xbf16>, vector<8x32xf32> -> vector<8x32xf32>
    %41 = arith.addf %26, %40 : vector<8x32xf32>
    %c0_24 = arith.constant 0 : index
    %c1_25 = arith.constant 1 : index
    %c0_26 = arith.constant 0 : index
    %c0_27 = arith.constant 0 : index
    %42 = vector.load %arg6[%c0_24, %c1_25, %c0_26, %c0_27] : memref<1x3x32x32xbf16, #tpu.memory_space<vmem>>, vector<1x1x32x32xbf16>
    %43 = vector.shape_cast %42 : vector<1x1x32x32xbf16> to vector<32x32xbf16>
    %cst_28 = arith.constant dense<0.000000e+00> : vector<8x32xf32>
    %44 = tpu.matmul %37, %43, %cst_28 {dimension_numbers = #tpu.dot_dimension_numbers<[1], [0], [0], [1], [0, 0, 1, 1], [], []>} : vector<8x32xbf16>, vector<32x32xbf16>, vector<8x32xf32> -> vector<8x32xf32>
    %45 = arith.addf %29, %44 : vector<8x32xf32>
    %c2_i32 = arith.constant 2 : i32
    %46 = tpu.dynamic_rotate %5 by %c2_i32 dim 0 : vector<8x32xf32>, i32 -> vector<8x32xf32>
    %c2_i32_29 = arith.constant 2 : i32
    %47 = vector.broadcast %c2_i32_29 : i32 to vector<8x1xi32>
    %48 = arith.cmpi sge, %22, %47 : vector<8x1xi32>
    %cst_30 = arith.constant 0.000000e+00 : f32
    %49 = vector.shape_cast %48 : vector<8x1xi1> to vector<8x1xi1>
    %50 = vector.broadcast %49 : vector<8x1xi1> to vector<8x32xi1>
    %51 = vector.broadcast %cst_30 : f32 to vector<8x32xf32>
    %52 = arith.select %50, %46, %51 : vector<8x32xi1>, vector<8x32xf32>
    %53 = arith.truncf %52 : vector<8x32xf32> to vector<8x32xbf16>
    %c0_31 = arith.constant 0 : index
    %c0_32 = arith.constant 0 : index
    %c0_33 = arith.constant 0 : index
    %c0_34 = arith.constant 0 : index
    %54 = vector.load %arg5[%c0_31, %c0_32, %c0_33, %c0_34] : memref<1x3x32x32xbf16, #tpu.memory_space<vmem>>, vector<1x1x32x32xbf16>
    %55 = vector.shape_cast %54 : vector<1x1x32x32xbf16> to vector<32x32xbf16>
    %cst_35 = arith.constant dense<0.000000e+00> : vector<8x32xf32>
    %56 = tpu.matmul %53, %55, %cst_35 {dimension_numbers = #tpu.dot_dimension_numbers<[1], [0], [0], [1], [0, 0, 1, 1], [], []>} : vector<8x32xbf16>, vector<32x32xbf16>, vector<8x32xf32> -> vector<8x32xf32>
    %57 = arith.addf %41, %56 : vector<8x32xf32>
    %c0_36 = arith.constant 0 : index
    %c0_37 = arith.constant 0 : index
    %c0_38 = arith.constant 0 : index
    %c0_39 = arith.constant 0 : index
    %58 = vector.load %arg6[%c0_36, %c0_37, %c0_38, %c0_39] : memref<1x3x32x32xbf16, #tpu.memory_space<vmem>>, vector<1x1x32x32xbf16>
    %59 = vector.shape_cast %58 : vector<1x1x32x32xbf16> to vector<32x32xbf16>
    %cst_40 = arith.constant dense<0.000000e+00> : vector<8x32xf32>
    %60 = tpu.matmul %53, %59, %cst_40 {dimension_numbers = #tpu.dot_dimension_numbers<[1], [0], [0], [1], [0, 0, 1, 1], [], []>} : vector<8x32xbf16>, vector<32x32xbf16>, vector<8x32xf32> -> vector<8x32xf32>
    %61 = arith.addf %45, %60 : vector<8x32xf32>
    %c0_41 = arith.constant 0 : index
    %c0_42 = arith.constant 0 : index
    %c0_43 = arith.constant 0 : index
    %62 = vector.load %arg7[%c0_41, %c0_42, %c0_43] : memref<1x1x32xf32, #tpu.memory_space<vmem>>, vector<1x1x32xf32>
    %63 = vector.shape_cast %62 : vector<1x1x32xf32> to vector<1x32xf32>
    %64 = vector.broadcast %63 : vector<1x32xf32> to vector<8x32xf32>
    %65 = arith.addf %57, %64 : vector<8x32xf32>
    %c0_44 = arith.constant 0 : index
    %c0_45 = arith.constant 0 : index
    %c0_46 = arith.constant 0 : index
    %66 = vector.load %arg8[%c0_44, %c0_45, %c0_46] : memref<1x1x32xf32, #tpu.memory_space<vmem>>, vector<1x1x32xf32>
    %67 = vector.shape_cast %66 : vector<1x1x32xf32> to vector<1x32xf32>
    %68 = vector.broadcast %67 : vector<1x32xf32> to vector<8x32xf32>
    %69 = arith.addf %61, %68 : vector<8x32xf32>
    %70 = arith.negf %69 : vector<8x32xf32>
    %71 = math.exp %70 : vector<8x32xf32>
    %cst_47 = arith.constant 1.000000e+00 : f32
    %72 = vector.broadcast %cst_47 : f32 to vector<8x32xf32>
    %73 = arith.addf %72, %71 : vector<8x32xf32>
    %74 = arith.divf %72, %73 : vector<8x32xf32>
    %75 = arith.mulf %65, %74 : vector<8x32xf32>
    %76 = arith.truncf %75 : vector<8x32xf32> to vector<8x32xbf16>
    %c0_48 = arith.constant 0 : index
    %c0_49 = arith.constant 0 : index
    %77 = vector.load %arg11[%c0_48, %c0_49] : memref<32x32xbf16, #tpu.memory_space<vmem>>, vector<32x32xbf16>
    %cst_50 = arith.constant dense<0.000000e+00> : vector<8x32xf32>
    %78 = tpu.matmul %76, %77, %cst_50 {dimension_numbers = #tpu.dot_dimension_numbers<[1], [0], [0], [1], [0, 0, 1, 1], [], []>} : vector<8x32xbf16>, vector<32x32xbf16>, vector<8x32xf32> -> vector<8x32xf32>
    %c0_51 = arith.constant 0 : index
    %c0_52 = arith.constant 0 : index
    %79 = vector.load %arg12[%c0_51, %c0_52] : memref<1x32xf32, #tpu.memory_space<vmem>>, vector<1x32xf32>
    %80 = vector.broadcast %79 : vector<1x32xf32> to vector<8x32xf32>
    %81 = arith.addf %78, %80 : vector<8x32xf32>
    %82 = arith.extf %1 : vector<8x32xbf16> to vector<8x32xf32>
    %83 = arith.addf %81, %82 : vector<8x32xf32>
    %cst_53 = arith.constant 0.707106769 : f32
    %84 = vector.broadcast %cst_53 : f32 to vector<8x32xf32>
    %85 = arith.mulf %83, %84 : vector<8x32xf32>
    %86 = vector.shape_cast %85 : vector<8x32xf32> to vector<1x8x32xf32>
    %87 = arith.truncf %86 : vector<1x8x32xf32> to vector<1x8x32xbf16>
    %c0_54 = arith.constant 0 : index
    %c0_55 = arith.constant 0 : index
    %c0_56 = arith.constant 0 : index
    %88 = vector.load %arg3[%c0_54, %c0_55, %c0_56] : memref<1x8x32xbf16, #tpu.memory_space<vmem>>, vector<1x8x32xbf16>
    "tpu.trace_start"() <{level = 10 : i32, message = "bte,bse->bts"}> : () -> ()
    %cst_57 = arith.constant dense<0.000000e+00> : vector<1x8x8xf32>
    %89 = tpu.matmul %87, %88, %cst_57 {dimension_numbers = #tpu.dot_dimension_numbers<[2], [2], [1], [1], [0, 0, 0, 1, 1, 1], [0], [0]>} : vector<1x8x32xbf16>, vector<1x8x32xbf16>, vector<1x8x8xf32> -> vector<1x8x8xf32>
    "tpu.trace_stop"() : () -> ()
    %cst_58 = arith.constant dense<0xFF800000> : vector<1x8xf32>
    %90 = vector.multi_reduction <maximumf>, %89, %cst_58 [2] : vector<1x8x8xf32> to vector<1x8xf32>
    %91 = vector.shape_cast %90 : vector<1x8xf32> to vector<1x8x1xf32>
    %92 = vector.broadcast %91 : vector<1x8x1xf32> to vector<1x8x8xf32>
    %93 = arith.subf %89, %92 : vector<1x8x8xf32>
    %94 = math.exp %93 : vector<1x8x8xf32>
    %cst_59 = arith.constant dense<0.000000e+00> : vector<1x8xf32>
    %95 = vector.multi_reduction <add>, %94, %cst_59 [2] : vector<1x8x8xf32> to vector<1x8xf32>
    %96 = vector.shape_cast %95 : vector<1x8xf32> to vector<1x8x1xf32>
    %97 = tpu.reciprocal %96 {approx = true} : vector<1x8x1xf32> -> vector<1x8x1xf32>
    %98 = vector.broadcast %97 : vector<1x8x1xf32> to vector<1x8x8xf32>
    %99 = arith.mulf %94, %98 : vector<1x8x8xf32>
    %100 = arith.truncf %99 : vector<1x8x8xf32> to vector<1x8x8xbf16>
    %c0_60 = arith.constant 0 : index
    %c0_61 = arith.constant 0 : index
    %c0_62 = arith.constant 0 : index
    %101 = vector.load %arg4[%c0_60, %c0_61, %c0_62] : memref<1x8x32xbf16, #tpu.memory_space<vmem>>, vector<1x8x32xbf16>
    "tpu.trace_start"() <{level = 10 : i32, message = "bts,bse->bte"}> : () -> ()
    %cst_63 = arith.constant dense<0.000000e+00> : vector<1x8x32xf32>
    %102 = tpu.matmul %100, %101, %cst_63 {dimension_numbers = #tpu.dot_dimension_numbers<[2], [1], [1], [2], [0, 0, 0, 1, 1, 2], [0], [0]>} : vector<1x8x8xbf16>, vector<1x8x32xbf16>, vector<1x8x32xf32> -> vector<1x8x32xf32>
    "tpu.trace_stop"() : () -> ()
    %103 = vector.shape_cast %102 : vector<1x8x32xf32> to vector<8x32xf32>
    %104 = arith.truncf %103 : vector<8x32xf32> to vector<8x32xbf16>
    %c0_64 = arith.constant 0 : index
    %c0_65 = arith.constant 0 : index
    %105 = vector.load %arg13[%c0_64, %c0_65] : memref<32x32xbf16, #tpu.memory_space<vmem>>, vector<32x32xbf16>
    %cst_66 = arith.constant dense<0.000000e+00> : vector<8x32xf32>
    %106 = tpu.matmul %104, %105, %cst_66 {dimension_numbers = #tpu.dot_dimension_numbers<[1], [0], [0], [1], [0, 0, 1, 1], [], []>} : vector<8x32xbf16>, vector<32x32xbf16>, vector<8x32xf32> -> vector<8x32xf32>
    %c0_67 = arith.constant 0 : index
    %c0_68 = arith.constant 0 : index
    %107 = vector.load %arg14[%c0_67, %c0_68] : memref<1x32xf32, #tpu.memory_space<vmem>>, vector<1x32xf32>
    %108 = vector.broadcast %107 : vector<1x32xf32> to vector<8x32xf32>
    %109 = arith.addf %106, %108 : vector<8x32xf32>
    %110 = arith.addf %75, %109 : vector<8x32xf32>
    %cst_69 = arith.constant 0.707106769 : f32
    %111 = vector.broadcast %cst_69 : f32 to vector<8x32xf32>
    %112 = arith.mulf %110, %111 : vector<8x32xf32>
    %113 = arith.addf %112, %5 : vector<8x32xf32>
    %cst_70 = arith.constant 0.707106769 : f32
    %114 = vector.broadcast %cst_70 : f32 to vector<8x32xf32>
    %115 = arith.mulf %113, %114 : vector<8x32xf32>
    %c0_71 = arith.constant 0 : index
    %c0_72 = arith.constant 0 : index
    %116 = vector.load %arg17[%c0_71, %c0_72] : memref<8x32xf32, #tpu.memory_space<vmem>>, vector<8x32xf32>
    tpu.vector_store %arg17[%c0_71, %c0_72], %115 {strides = array<i32>} : memref<8x32xf32, #tpu.memory_space<vmem>>, vector<8x32xf32>,
    %c1_i32_73 = arith.constant 1 : i32
    %117 = arith.cmpi eq, %arg1, %c1_i32_73 : i32
    %118 = arith.extui %117 : i1 to i32
    %c0_i32_74 = arith.constant 0 : i32
    %119 = arith.cmpi ne, %118, %c0_i32_74 : i32
    scf.if %119 {
      %120 = vector.shape_cast %115 : vector<8x32xf32> to vector<1x8x32xf32>
      %c0_75 = arith.constant 0 : index
      %c0_76 = arith.constant 0 : index
      %c0_77 = arith.constant 0 : index
      %121 = vector.load %arg15[%c0_75, %c0_76, %c0_77] : memref<1x8x32xf32, #tpu.memory_space<vmem>>, vector<1x8x32xf32>
      tpu.vector_store %arg15[%c0_75, %c0_76, %c0_77], %120 {strides = array<i32>} : memref<1x8x32xf32, #tpu.memory_space<vmem>>, vector<1x8x32xf32>,
      %122 = arith.truncf %99 : vector<1x8x8xf32> to vector<1x8x8xbf16>
      %c0_78 = arith.constant 0 : index
      %c0_79 = arith.constant 0 : index
      %c0_80 = arith.constant 0 : index
      %123 = vector.load %arg16[%c0_78, %c0_79, %c0_80] : memref<1x8x8xbf16, #tpu.memory_space<vmem>>, vector<1x8x8xbf16>
      tpu.vector_store %arg16[%c0_78, %c0_79, %c0_80], %122 {strides = array<i32>} : memref<1x8x8xbf16, #tpu.memory_space<vmem>>, vector<1x8x8xbf16>,
    } else {
    }
    return
  }
  func.func @transform_0(%arg0: i32, %arg1: i32) -> (i32, i32, i32) {
    %c0_i32 = arith.constant 0 : i32
    %c0_i32_0 = arith.constant 0 : i32
    %c0_i32_1 = arith.constant 0 : i32
    return %arg0, %c0_i32, %c0_i32_0 : i32, i32, i32
  }
  func.func @transform_1(%arg0: i32, %arg1: i32) -> (i32, i32, i32) {
    %c0_i32 = arith.constant 0 : i32
    %c0_i32_0 = arith.constant 0 : i32
    %c0_i32_1 = arith.constant 0 : i32
    return %arg0, %c0_i32, %c0_i32_0 : i32, i32, i32
  }
  func.func @transform_2(%arg0: i32, %arg1: i32) -> (i32, i32, i32) {
    %c0_i32 = arith.constant 0 : i32
    %c0_i32_0 = arith.constant 0 : i32
    %c0_i32_1 = arith.constant 0 : i32
    return %arg0, %c0_i32, %c0_i32_0 : i32, i32, i32
  }
  func.func @transform_3(%arg0: i32, %arg1: i32) -> (i32, i32, i32, i32) {
    %c0_i32 = arith.constant 0 : i32
    %c0_i32_0 = arith.constant 0 : i32
    %c0_i32_1 = arith.constant 0 : i32
    %c0_i32_2 = arith.constant 0 : i32
    return %arg1, %c0_i32, %c0_i32_0, %c0_i32_1 : i32, i32, i32, i32
  }
  func.func @transform_4(%arg0: i32, %arg1: i32) -> (i32, i32, i32, i32) {
    %c0_i32 = arith.constant 0 : i32
    %c0_i32_0 = arith.constant 0 : i32
    %c0_i32_1 = arith.constant 0 : i32
    %c0_i32_2 = arith.constant 0 : i32
    return %arg1, %c0_i32, %c0_i32_0, %c0_i32_1 : i32, i32, i32, i32
  }
  func.func @transform_5(%arg0: i32, %arg1: i32) -> (i32, i32, i32) {
    %c0_i32 = arith.constant 0 : i32
    %c0_i32_0 = arith.constant 0 : i32
    %c0_i32_1 = arith.constant 0 : i32
    return %arg1, %c0_i32, %c0_i32_0 : i32, i32, i32
  }
  func.func @transform_6(%arg0: i32, %arg1: i32) -> (i32, i32, i32) {
    %c0_i32 = arith.constant 0 : i32
    %c0_i32_0 = arith.constant 0 : i32
    %c0_i32_1 = arith.constant 0 : i32
    return %arg1, %c0_i32, %c0_i32_0 : i32, i32, i32
  }
  func.func @transform_7(%arg0: i32, %arg1: i32) -> (i32, i32) {
    %c0_i32 = arith.constant 0 : i32
    %c0_i32_0 = arith.constant 0 : i32
    %c0_i32_1 = arith.constant 0 : i32
    return %c0_i32, %c0_i32_0 : i32, i32
  }
  func.func @transform_8(%arg0: i32, %arg1: i32) -> (i32, i32) {
    %c0_i32 = arith.constant 0 : i32
    %c0_i32_0 = arith.constant 0 : i32
    %c0_i32_1 = arith.constant 0 : i32
    return %c0_i32, %c0_i32_0 : i32, i32
  }
  func.func @transform_9(%arg0: i32, %arg1: i32) -> (i32, i32) {
    %c0_i32 = arith.constant 0 : i32
    %c0_i32_0 = arith.constant 0 : i32
    %c0_i32_1 = arith.constant 0 : i32
    return %c0_i32, %c0_i32_0 : i32, i32
  }
  func.func @transform_10(%arg0: i32, %arg1: i32) -> (i32, i32) {
    %c0_i32 = arith.constant 0 : i32
    %c0_i32_0 = arith.constant 0 : i32
    %c0_i32_1 = arith.constant 0 : i32
    return %c0_i32, %c0_i32_0 : i32, i32
  }
  func.func @transform_11(%arg0: i32, %arg1: i32) -> (i32, i32) {
    %c0_i32 = arith.constant 0 : i32
    %c0_i32_0 = arith.constant 0 : i32
    %c0_i32_1 = arith.constant 0 : i32
    return %c0_i32, %c0_i32_0 : i32, i32
  }
  func.func @transform_12(%arg0: i32, %arg1: i32) -> (i32, i32) {
    %c0_i32 = arith.constant 0 : i32
    %c0_i32_0 = arith.constant 0 : i32
    %c0_i32_1 = arith.constant 0 : i32
    return %c0_i32, %c0_i32_0 : i32, i32
  }
  func.func @transform_13(%arg0: i32, %arg1: i32) -> (i32, i32, i32) {
    %c0_i32 = arith.constant 0 : i32
    %c0_i32_0 = arith.constant 0 : i32
    %c0_i32_1 = arith.constant 0 : i32
    return %arg0, %c0_i32, %c0_i32_0 : i32, i32, i32
  }
  func.func @transform_14(%arg0: i32, %arg1: i32) -> (i32, i32, i32) {
    %c0_i32 = arith.constant 0 : i32
    %c0_i32_0 = arith.constant 0 : i32
    %c0_i32_1 = arith.constant 0 : i32
    return %arg0, %c0_i32, %c0_i32_0 : i32, i32, i32
  }
}

</mosaic_0001>

<bundles_post_ra>
// kernel: tpu_custom_call.1
= control target key start
LH: loop header
LB: loop body
LE: loop exit
PB: predicated region body
PF: predicated region fallthrough
CT: control target
= control target key end

     0   :  { %s3314_s0 = inlined_call_operand.hbm [shape: bf16[2,8,32], index: 0, kind: input, shape index: {}]   ;;  %s3315_s1 = inlined_call_operand.hbm [shape: bf16[2,8,32], index: 1, kind: input, shape index: {}]   ;;  %s3316_s2 = inlined_call_operand.hbm [shape: bf16[2,8,32], index: 2, kind: input, shape index: {}]   ;;  %s3317_s3 = inlined_call_operand.hbm [shape: bf16[2,3,32,32], index: 3, kind: input, shape index: {}]   ;;  %s3318_s4 = inlined_call_operand.hbm [shape: bf16[2,3,32,32], index: 4, kind: input, shape index: {}]   ;;  %s3319_s5 = inlined_call_operand.vmem [shape: f32[2,1,32], index: 5, kind: input, shape index: {}]   ;;  %s3320_s6 = inlined_call_operand.hbm [shape: f32[2,1,32], index: 6, kind: input, shape index: {}]   ;;  %s3321_s7 = inlined_call_operand.vmem [shape: bf16[32,32], index: 7, kind: input, shape index: {}]   ;;  %s3322_s8 = inlined_call_operand.hbm [shape: f32[1,32], index: 8, kind: input, shape index: {}]   ;;  %s3323_s9 = inlined_call_operand.vmem [shape: bf16[32,32], index: 9, kind: input, shape index: {}]   ;;  %s3324_s10 = inlined_call_operand.vmem [shape: f32[1,32], index: 10, kind: input, shape index: {}]   ;;  %s3325_s11 = inlined_call_operand.hbm [shape: bf16[32,32], index: 11, kind: input, shape index: {}]   ;;  %s3326_s12 = inlined_call_operand.vmem [shape: f32[1,32], index: 12, kind: input, shape index: {}]   ;;  %s3327_s13 = inlined_call_operand.hbm [shape: f32[2,8,32], index: 13, kind: output, shape index: {0}]   ;;  %s3328_s14 = inlined_call_operand.hbm [shape: bf16[2,8,8], index: 14, kind: output, shape index: {1}]  }
   0x1   :  { %3372 = sst [smem:[#allocation44_spill]] %s3315_s1 }
   0x2   :  { %3373 = sst [smem:[#allocation45_spill]] %s3317_s3 }
   0x3   :  { %3374 = sst [smem:[#allocation46_spill]] %s3319_s5 }
   0x4   :  { %3375 = sst [smem:[#allocation47_spill]] %s3321_s7 }
   0x5   :  { %3376 = sst [smem:[#allocation48_spill]] %s3322_s8 }
   0x6   :  { %3377 = sst [smem:[#allocation49_spill]] %s3323_s9 }
   0x7   :  { %3378 = sst [smem:[#allocation50_spill]] %s3324_s10 }
   0x8   :  { %3379 = sst [smem:[#allocation51_spill]] %s3326_s12 }
   0x9   :  { %3380 = sst [smem:[#allocation52_spill]] %s3327_s13 }
   0xa   :  { %3381 = sst [smem:[#allocation53_spill]] %s3328_s14 }
   0xb   :  { %20 = vsyncpa [#allocation4], 0 }
   0xc   :  { %22 = vsyncpa [#allocation4 + $0x1], 0 }
   0xd   :  { %23 = vsyncpa [#allocation7], 0 }
   0xe   :  { %25 = vsyncpa [#allocation7 + $0x1], 0 }
   0xf   :  { %26 = vsyncpa [#allocation10], 0 }
  0x10   :  { %28 = vsyncpa [#allocation10 + $0x1], 0 }
  0x11   :  { %29 = vsyncpa [#allocation13], 0 }
  0x12   :  { %31 = vsyncpa [#allocation13 + $0x1], 0 }
  0x13   :  { %32 = vsyncpa [#allocation16], 0 }
  0x14   :  { %33 = vsyncpa [#allocation5], 0 }
  0x15   :  { %35 = vsyncpa [#allocation5 + $0x1], 0 }
  0x16   :  { %36 = vsyncpa [#allocation19], 0 }
  0x17   :  { %38 = vsyncpa [#allocation19 + $0x1], 0  ;;  %s2633_s29 = smov 0   ;;  %s2635_s30 = smov 0  }
  0x18   :  { %s2637_s15 = smov 0   ;;  %s2639_s16 = smov 0  }
  0x19   :  { %s2641_s17 = smov 0   ;;  %s2643_s18 = smov 0  }
  0x1a   :  { %s2645_s19 = smov 0   ;;  %s2647_s20 = smov 0  }
  0x1b   :  { %s2649_s21 = smov 0   ;;  %s2651_s22 = smov 0  }
  0x1c   :  { %s2653_s23 = smov 0  }
  0x1d LB: > { %3382 = sst [smem:[#allocation28_spill]] %s2504_s30  ;;  %s2687_s24 = sadd.s32 4294967295, %s2540_s23   ;;  %s2540_s23 = sphi %s2653_s23, %s44_s23   ;;  %s2536_s22 = sphi %s2651_s22, %s3470_s22   ;;  %s2532_s21 = sphi %s2649_s21, %s3476_s21   ;;  %s2528_s20 = sphi %s2647_s20, %s3468_s20   ;;  %s2524_s19 = sphi %s2645_s19, %s3475_s19   ;;  %s2520_s18 = sphi %s2643_s18, %s3474_s18   ;;  %s2516_s17 = sphi %s2641_s17, %s3473_s17   ;;  %s2512_s16 = sphi %s2639_s16, %s3466_s16   ;;  %s2508_s15 = sphi %s2637_s15, %s3472_s15   ;;  %s2504_s30 = sphi %s2635_s30, %s3471_s30   ;;  %s2500_s29 = sphi %s2633_s29, %s3464_s29  }
  0x1e   : > { %3383 = sst [smem:[#allocation29_spill]] %s2512_s16  ;;  %p154_p0 = scmp.ne.s32.totalorder %s2504_s30, %s2500_s29 }
  0x1f   : > { %3384 = sst [smem:[#allocation30_spill]] %s2516_s17  ;;  %p3333_p1 = scmp.eq.s32.totalorder %s2687_s24, 0 }
  0x20   : > { %3385 = sst [smem:[#allocation31_spill]] %s2524_s19  ;;  %p1745_p3 = scmp.ge.s32.totalorder %s2540_s23, 1 }
  0x21   : > { %3386 = sst [smem:[#allocation32_spill]] %s2528_s20  ;;  %p421_p4 = scmp.lt.s32.totalorder %s2540_s23, 5 }
  0x22   : > { %3387 = sst [smem:[#allocation33_spill]] %s2536_s22  ;;  %p2696_p5 = por %p154_p0, %p3333_p1 }
  0x23   : > { %3388 = sst [smem:[#allocation34_spill]] %s2540_s23  ;;  %p2700_p6 = pnand %p1745_p3, %p421_p4 }
  0x24   : > { %3389 = sst [smem:[#allocation35_spill]] %s2687_s24  ;;  %s2542_s27 = smov [#allocation14]  }
  0x25   : > { %s3390_s25 = scalar_select %p2696_p5, 1, 0 }
  0x26   : > { %s3392_s26 = scalar_select %p2700_p6, 1, 0 }
  0x27   : > { %3391 = sst [smem:[#allocation36_spill]] %s3390_s25  ;;  %s437_s28 = sshll.u32 %s2542_s27, 4  ;;  %s438_s28 = int_to_ptr.vmem [resolvable:$true] %s437_s28 }
  0x28   : > { %p1969_p7 = pneg %p2700_p6  ;;  %s3394_s8 = sld [smem:[#allocation48_spill]] }
  0x2a   : > { %p2708_p8 = pnand %p1969_p7, %p3333_p1 }
  0x2c   : > { %s3393_s29 = scalar_select %p2708_p8, 1, 0 }
  0x2d   : > { %p3339_p10 = pneg %p2708_p8 }
  0x2e   : > { %s2130_s20 = scalar_lea.hbm %s3394_s8, 16 }
  0x2f   : > { %p2131_p9 = scmp.ne.s32.totalorder %s3394_s8, %s2130_s20  ;;  %p2137_p13 = scmp.lt.u32.totalorder %s2130_s20, %s3394_s8 }
  0x31   : > { %p2133_p11 = pnand %p3339_p10, %p2131_p9 }
  0x33   : > { %p2134_p12 = pneg %p2133_p11 }
  0x35   : > { %p2139_p0 = pnand %p2137_p13, %p2134_p12 }
  0x37   : > { %2142 = shalt.err (!%p2139_p0)
}
  0x38   : > { %s2143_s13 = scalar_lea.vmem %s438_s28, 16  ;;  %s2150_s10 = scalar_lea.vmem %s438_s28, 32 }
  0x39   : > { %p2144_p3 = scmp.ne.s32.totalorder %s438_s28, %s2143_s13  ;;  %p2151_p2 = scmp.lt.s32.totalorder %s438_s28, %s438_s28 }
  0x3a   : > { %p2152_p1 = scmp.lt.s32.totalorder %s2150_s10, %s2143_s13 }
  0x3b   : > { %p2146_p4 = pnand %p2144_p3, %p3339_p10 }
  0x3c   : > { %p2153_p5 = por %p2152_p1, %p2151_p2 }
  0x3d   : > { %p2147_p7 = pneg %p2146_p4 }
  0x3f   : > { %p2154_p6 = pnand %p2153_p5, %p2147_p7 }
  0x41   : > { %2157 = shalt.err (!%p2154_p6)
}
  0x42   : > { %1972 = dma.hbm_to_vmem [thread:$0]  (!%p2708_p8), %s3394_s8, 16, %s438_s28, [#allocation13]  }
  0x43   : > { %s1744_s14 = sadd.s32 4294967294, %s2540_s23   ;;  %s53_s20 = sadd.s32 1, %s2532_s21 }
  0x44   : > { %p54_p1 = scmp.ge.s32.totalorder %s53_s20, 2  ;;  %s56_s27 = sadd.s32 1, %s2536_s22 }
  0x45   : > { %s63_s13 = sadd.s32 1, %s2520_s18  ;;  %p70_p2 = scmp.ne.s32.totalorder %s2520_s18, %s2516_s17 }
  0x46   : > { %s3478_s20 = smov (%p54_p1, %s53_s20), 0  ;;  %s3480_s27 = smov (!%p54_p1, %s56_s27), %s2536_s22 }
  0x47   : > { %3395 = sst [smem:[#allocation37_spill]] %s3478_s20  ;;  %p71_p5 = scmp.eq.s32.totalorder %s2540_s23, 0 }
  0x48   : > { %p76_p6 = scmp.ne.s32.totalorder %s2516_s17, %s2512_s16  ;;  %p58_p9 = scmp.ge.s32.totalorder %s3480_s27, 2 }
  0x49   : > { %s138_s28 = ssub.s32 %s2532_s21, %s3478_s20  ;;  %p2753_p11 = por %p71_p5, %p70_p2 }
  0x4a   : > { %p3397_p12 = scmp.eq.s32.totalorder %s2687_s24, 0  ;;  %s3482_s27 = smov (%p58_p9, %s3480_s27), 0 }
  0x4b   : > { %3400 = sst [smem:[#allocation39_spill]] %s3482_s27  ;;  %p139_p0 = scmp.eq.s32.totalorder %s138_s28, 0 }
  0x4c   : > { %p2762_p13 = por %p3397_p12, %p76_p6  ;;  %s141_s9 = sadd.s32 1, %s2508_s15 }
  0x4d   : > { %s60_s8 = ssub.s32 %s2536_s22, %s3482_s27  ;;  %p148_p3 = scmp.ne.s32.totalorder %s2508_s15, %s2504_s30 }
  0x4e   : > { %s3398_s12 = scalar_select %p2762_p13, 1, 0 }
  0x4f   : > { %p61_p4 = scmp.eq.s32.totalorder %s60_s8, 0  ;;  %p3401_p7 = scmp.eq.s32.totalorder %s2687_s24, 3 }
  0x50   : > { %3399 = sst [smem:[#allocation38_spill]] %s3398_s12  ;;  %p2790_p9 = por %p148_p3, %p71_p5 }
  0x51   : > { %p2778_p1 = por %p3401_p7, %p70_p2  ;;  %p388_p12 = scmp.eq.s32.totalorder %s1744_s14, 3 }
  0x52   : > { %s2783_s7 = scalar_select %p139_p0, %s2508_s15, %s141_s9  }
  0x53   : > { %s3402_s20 = scalar_select %p2778_p1, 1, 0 }
  0x54   : > { %3404 = sst [smem:[#allocation41_spill]] %s2783_s7  ;;  %p3351_p10 = scmp.lt.s32.totalorder %s2540_s23, 4 }
  0x55   : > { %3403 = sst [smem:[#allocation40_spill]] %s3402_s20  ;;  %s3343_s28 = sand.u32 1, %s2520_s18  }
  0x56   : > { %s2786_s5 = scalar_select %p61_p4, %s2520_s18, %s63_s13  }
  0x57   : > { %s3406_s19 = scalar_select %p2790_p9, 1, 0 }
  0x58   : > { %3405 = sst [smem:[#allocation42_spill]] %s2786_s5  ;;  %p2799_p13 = por %p388_p12, %p76_p6 }
  0x59   : > { %s2805_s27 = sshll.u32 %s3343_s28, 2  ;;  %s2808_s9 = sshll.u32 %s2536_s22, 6 }
  0x5a   : > { %s3407_s8 = scalar_select %p2799_p13, 1, 0 }
  0x5b   : > { %p2814_p2 = pnand %p3351_p10, %p2753_p11  ;;  %s2819_s14 = sand.u32 1, %s2540_s23  }
  0x5c   : > { %3408 = sst [smem:[#allocation43_spill]] %s3407_s8  ;;  %s3410_s1 = sld [smem:[#allocation44_spill]] }
  0x5d   : > { %s3409_s13 = scalar_select %p2814_p2, 1, 0 }
  0x5e   : > { %s492_s10 = scalar_lea.vmem [#allocation6], %s2805_s27  ;;  %p2835_p6 = pneg %p2814_p2 }
  0x5f   : > { %s499_s28 = sshll.u32 %s492_s10, 4  ;;  %s2828_s28 = int_to_ptr.vmem [resolvable:$true] %s499_s28 }
  0x60   : > { %s3411_s20 = scalar_select %p2835_p6, 1, 0 }
  0x62   : > { %s2825_s8 = scalar_lea.hbm %s3410_s1, %s2808_s9  ;;  %s2163_s25 = scalar_lea.hbm %s3410_s1, 128 }
  0x63   : > { %s2158_s16 = scalar_lea.hbm %s2825_s8, 64  ;;  %p2164_p3 = scmp.lt.u32.totalorder %s2825_s8, %s3410_s1 }
  0x64   : > { %p2159_p5 = scmp.ne.s32.totalorder %s2825_s8, %s2158_s16  ;;  %p2165_p4 = scmp.lt.u32.totalorder %s2163_s25, %s2158_s16 }
  0x65   : > { %p2167_p12 = scmp.lt.u32.totalorder %s2158_s16, %s2825_s8 }
  0x66   : > { %p2161_p11 = pnand %p2835_p6, %p2159_p5  ;;  %p2166_p7 = por %p2165_p4, %p2164_p3 }
  0x68   : > { %p2162_p0 = pneg %p2161_p11  ;;  %p2168_p10 = por %p2167_p12, %p2166_p7 }
  0x6a   : > { %p2169_p13 = pnand %p2168_p10, %p2162_p0 }
  0x6c   : > { %2172 = shalt.err (!%p2169_p13)
}
  0x6d   : > { %s2173_s22 = scalar_lea.vmem %s2828_s28, 64  ;;  %s2543_s5 = smov [#allocation6]  }
  0x6e   : > { %p2174_p5 = scmp.ne.s32.totalorder %s2828_s28, %s2173_s22  ;;  %s2178_s7 = sshll.u32 %s2543_s5, 4  ;;  %s2179_s7 = int_to_ptr.vmem [resolvable:$false] %s2178_s7 }
  0x6f   : > { %s2180_s30 = scalar_lea.vmem %s2179_s7, 128  ;;  %p2181_p8 = scmp.lt.s32.totalorder %s2828_s28, %s2179_s7 }
  0x70   : > { %p2176_p11 = pnand %p2174_p5, %p2835_p6  ;;  %p2182_p9 = scmp.lt.s32.totalorder %s2180_s30, %s2173_s22 }
  0x72   : > { %p2177_p1 = pneg %p2176_p11  ;;  %p2183_p3 = por %p2182_p9, %p2181_p8 }
  0x74   : > { %p2184_p4 = pnand %p2183_p3, %p2177_p1 }
  0x76   : > { %2187 = shalt.err (!%p2184_p4)
}
  0x77   : > { %s3412_s16 = scalar_lea.sflag [#allocation7], %s2819_s14  ;;  %p3413_p10 = scmp.ne.s32.totalorder %s3406_s19, 0 }
  0x78   : > { %1982 = dma.hbm_to_vmem [thread:$0]  (!%p2814_p2), %s2825_s8, 64, %s2828_s28, %s3412_s16  }
  0x79   : > { %p3414_p13 = scmp.lt.s32.totalorder %s2540_s23, 4  ;;  %s3357_s25 = sand.u32 1, %s2508_s15  }
  0x7a   : > { %s2871_s10 = smul.u32 48, %s3357_s25  ;;  %s2544_s7 = smov [#allocation15]  }
  0x7b   : > { %p2864_p0 = pnand %p3414_p13, %p3413_p10  ;;  %s3358_s5 = smul.u32 768, %s2532_s21 }
  0x7c   : > { %s453_s30 = sshll.u32 %s2544_s7, 4  ;;  %s3416_s3 = sld [smem:[#allocation45_spill]]  ;;  %s2884_s30 = int_to_ptr.vmem [resolvable:$true] %s453_s30 }
  0x7d   : > { %s3415_s22 = scalar_select %p2864_p0, 1, 0 }
  0x7e   : > { %s528_s19 = scalar_lea.vmem [#allocation9], %s2871_s10  ;;  %p2891_p1 = pneg %p2864_p0 }
  0x7f   : > { %s535_s8 = sshll.u32 %s528_s19, 4  ;;  %s2882_s8 = int_to_ptr.vmem [resolvable:$true] %s535_s8 }
  0x80   : > { %s3417_s7 = scalar_select %p2891_p1, 1, 0 }
  0x82   : > { %s2879_s28 = scalar_lea.hbm %s3416_s3, %s3358_s5  ;;  %s2193_s19 = scalar_lea.hbm %s3416_s3, 1536 }
  0x83   : > { %s2188_s25 = scalar_lea.hbm %s2879_s28, 768  ;;  %p2194_p12 = scmp.lt.u32.totalorder %s2879_s28, %s3416_s3 }
  0x84   : > { %p2189_p8 = scmp.ne.s32.totalorder %s2879_s28, %s2188_s25  ;;  %p2195_p5 = scmp.lt.u32.totalorder %s2193_s19, %s2188_s25 }
  0x85   : > { %p2197_p3 = scmp.lt.u32.totalorder %s2188_s25, %s2879_s28 }
  0x86   : > { %p2191_p9 = pnand %p2891_p1, %p2189_p8  ;;  %p2196_p11 = por %p2195_p5, %p2194_p12 }
  0x88   : > { %p2192_p7 = pneg %p2191_p9  ;;  %p2198_p4 = por %p2197_p3, %p2196_p11 }
  0x8a   : > { %p2199_p10 = pnand %p2198_p4, %p2192_p7 }
  0x8c   : > { %2202 = shalt.err (!%p2199_p10)
}
  0x8d   : > { %s2203_s16 = scalar_lea.vmem %s2882_s8, 768  ;;  %s2545_s1 = smov [#allocation9]  }
  0x8e   : > { %p2204_p13 = scmp.ne.s32.totalorder %s2882_s8, %s2203_s16  ;;  %s2208_s24 = sshll.u32 %s2545_s1, 4  ;;  %s2209_s24 = int_to_ptr.vmem [resolvable:$false] %s2208_s24 }
  0x8f   : > { %s2210_s23 = scalar_lea.vmem %s2209_s24, 1536  ;;  %p2211_p2 = scmp.lt.s32.totalorder %s2882_s8, %s2209_s24 }
  0x90   : > { %p2206_p8 = pnand %p2204_p13, %p2891_p1  ;;  %p2212_p6 = scmp.lt.s32.totalorder %s2210_s23, %s2203_s16 }
  0x92   : > { %p2207_p9 = pneg %p2206_p8  ;;  %p2213_p12 = por %p2212_p6, %p2211_p2 }
  0x94   : > { %p2214_p5 = pnand %p2213_p12, %p2207_p9 }
  0x96   : > { %2217 = shalt.err (!%p2214_p5)
}
  0x97   : > { %s2546_s25 = smov 64   ;;  %s2547_s5 = smov 4  }
  0x98   : > { %s3418_s19 = scalar_lea.sflag [#allocation10], %s2819_s14  ;;  %s2218_s16 = scalar_lea.hbm %s3325_s11, 256 }
  0x99   : > { %1988 = dma.hbm_to_vmem [thread:$0]  (!%p2864_p0), %s2879_s28, 768, %s2882_s8, %s3418_s19, %s2546_s25, %s2546_s25, %s2547_s5  }
  0x9a   : > { %p2219_p2 = scmp.ne.s32.totalorder %s3325_s11, %s2218_s16  ;;  %p3419_p6 = scmp.ne.s32.totalorder %s3393_s29, 0 }
  0x9b   : > { %p2225_p4 = scmp.lt.u32.totalorder %s2218_s16, %s3325_s11 }
  0x9c   : > { %p3420_p7 = pneg %p3419_p6 }
  0x9e   : > { %p2221_p11 = pnand %p2219_p2, %p3420_p7 }
  0xa0   : > { %p2222_p3 = pneg %p2221_p11 }
  0xa2   : > { %p2227_p10 = pnand %p2225_p4, %p2222_p3 }
  0xa4   : > { %2230 = shalt.err (!%p2227_p10)
}
  0xa5   : > { %s2231_s3 = scalar_lea.vmem %s2884_s30, 256  ;;  %p3421_p8 = pmov %p3420_p7 }
  0xa6   : > { %p2232_p13 = scmp.ne.s32.totalorder %s2884_s30, %s2231_s3  ;;  %p2239_p5 = scmp.lt.s32.totalorder %s2884_s30, %s2884_s30 }
  0xa7   : > { %p2240_p2 = scmp.lt.s32.totalorder %s2231_s3, %s2231_s3 }
  0xa8   : > { %p2234_p9 = pnand %p2232_p13, %p3421_p8 }
  0xa9   : > { %p2241_p7 = por %p2240_p2, %p2239_p5 }
  0xaa   : > { %p2235_p12 = pneg %p2234_p9 }
  0xac   : > { %p2242_p11 = pnand %p2241_p7, %p2235_p12 }
  0xae   : > { %2245 = shalt.err (!%p2242_p11)
}
  0xaf   : > { %1975 = dma.hbm_to_vmem [thread:$0]  (!%p3419_p6), %s3325_s11, 256, %s2884_s30, [#allocation16], %s2546_s25, %s2546_s25, %s2547_s5  }
  0xb0   : > { %s2951_s19 = scalar_lea.hbm %s3314_s0, %s2808_s9  ;;  %s474_s29 = scalar_lea.vmem [#allocation3], %s2805_s27 }
  0xb1   : > { %s481_s1 = sshll.u32 %s474_s29, 4  ;;  %s3422_s16 = sand.u32 1, %s2520_s18   ;;  %s482_s1 = int_to_ptr.vmem [resolvable:$true] %s481_s1 }
  0xb2   : > { %s471_s24 = scalar_lea.sflag [#allocation4], %s3422_s16  ;;  %s2246_s23 = scalar_lea.hbm %s2951_s19, 64 }
  0xb3   : > { %p2247_p3 = scmp.ne.s32.totalorder %s2951_s19, %s2246_s23  ;;  %p3423_p4 = scmp.ne.s32.totalorder %s3411_s20, 0 }
  0xb4   : > { %s2251_s17 = scalar_lea.hbm %s3314_s0, 128  ;;  %p2252_p6 = scmp.lt.u32.totalorder %s2951_s19, %s3314_s0 }
  0xb5   : > { %p2249_p10 = pnand %p2247_p3, %p3423_p4  ;;  %p2253_p8 = scmp.lt.u32.totalorder %s2251_s17, %s2246_s23 }
  0xb6   : > { %p2255_p12 = scmp.lt.u32.totalorder %s2246_s23, %s2951_s19 }
  0xb7   : > { %p2250_p13 = pneg %p2249_p10  ;;  %p2254_p9 = por %p2253_p8, %p2252_p6 }
  0xb9   : > { %p2256_p5 = por %p2255_p12, %p2254_p9 }
  0xbb   : > { %p2257_p2 = pnand %p2256_p5, %p2250_p13 }
  0xbd   : > { %2260 = shalt.err (!%p2257_p2)
}
  0xbe   : > { %s2261_s8 = scalar_lea.vmem %s482_s1, 64  ;;  %s2548_s29 = smov [#allocation3]  }
  0xbf   : > { %p2262_p7 = scmp.ne.s32.totalorder %s482_s1, %s2261_s8  ;;  %s2266_s16 = sshll.u32 %s2548_s29, 4  ;;  %s2267_s16 = int_to_ptr.vmem [resolvable:$false] %s2266_s16 }
  0xc0   : > { %s2268_s30 = scalar_lea.vmem %s2267_s16, 128  ;;  %p2269_p10 = scmp.lt.s32.totalorder %s482_s1, %s2267_s16 }
  0xc1   : > { %p2264_p11 = pnand %p2262_p7, %p3423_p4  ;;  %p2270_p0 = scmp.lt.s32.totalorder %s2268_s30, %s2261_s8 }
  0xc3   : > { %p2265_p3 = pneg %p2264_p11  ;;  %p2271_p1 = por %p2270_p0, %p2269_p10 }
  0xc5   : > { %p2272_p6 = pnand %p2271_p1, %p2265_p3 }
  0xc7   : > { %2275 = shalt.err (!%p2272_p6)
}
  0xc8   : > { %p3424_p8 = scmp.ne.s32.totalorder %s3409_s13, 0  ;;  %s2977_s17 = scalar_lea.hbm %s3316_s2, %s2808_s9 }
  0xc9   : > { %s510_s12 = scalar_lea.vmem [#allocation8], %s2805_s27  ;;  %s2276_s8 = scalar_lea.hbm %s2977_s17, 64 }
  0xca   : > { %1979 = dma.hbm_to_vmem [thread:$0]  (!%p3424_p8), %s2951_s19, 64, %s482_s1, %s471_s24  }
  0xcb   : > { %s517_s28 = sshll.u32 %s510_s12, 4  ;;  %p2277_p0 = scmp.ne.s32.totalorder %s2977_s17, %s2276_s8  ;;  %s518_s28 = int_to_ptr.vmem [resolvable:$true] %s517_s28 }
  0xcc   : > { %s2281_s19 = scalar_lea.hbm %s3316_s2, 128  ;;  %p2282_p9 = scmp.lt.u32.totalorder %s2977_s17, %s3316_s2 }
  0xcd   : > { %p2279_p1 = pnand %p2277_p0, %p3423_p4  ;;  %p2283_p12 = scmp.lt.u32.totalorder %s2281_s19, %s2276_s8 }
  0xce   : > { %p2285_p2 = scmp.lt.u32.totalorder %s2276_s8, %s2977_s17 }
  0xcf   : > { %p2280_p13 = pneg %p2279_p1  ;;  %p2284_p5 = por %p2283_p12, %p2282_p9 }
  0xd1   : > { %p2286_p7 = por %p2285_p2, %p2284_p5 }
  0xd3   : > { %p2287_p11 = pnand %p2286_p7, %p2280_p13 }
  0xd5   : > { %2290 = shalt.err (!%p2287_p11)
}
  0xd6   : > { %s2291_s27 = scalar_lea.vmem %s518_s28, 64  ;;  %s2549_s9 = smov [#allocation8]  }
  0xd7   : > { %p2292_p3 = scmp.ne.s32.totalorder %s518_s28, %s2291_s27  ;;  %s2296_s30 = sshll.u32 %s2549_s9, 4  ;;  %s2297_s30 = int_to_ptr.vmem [resolvable:$false] %s2296_s30 }
  0xd8   : > { %s2298_s23 = scalar_lea.vmem %s2297_s30, 128  ;;  %p2299_p0 = scmp.lt.s32.totalorder %s518_s28, %s2297_s30 }
  0xd9   : > { %p2294_p10 = pnand %p2292_p3, %p3423_p4  ;;  %p2300_p1 = scmp.lt.s32.totalorder %s2298_s23, %s2291_s27 }
  0xdb   : > { %p2295_p6 = pneg %p2294_p10  ;;  %p2301_p8 = por %p2300_p1, %p2299_p0 }
  0xdd   : > { %p2302_p9 = pnand %p2301_p8, %p2295_p6 }
  0xdf   : > { %2305 = shalt.err (!%p2302_p9)
}
  0xe0   : > { %p3425_p12 = scmp.ne.s32.totalorder %s3409_s13, 0  ;;  %s3426_s3 = scalar_lea.sflag [#allocation7], %s2819_s14 }
  0xe1   : > { %s3427_s20 = smul.u32 768, %s2532_s21  ;;  %s549_s16 = scalar_lea.vmem [#allocation11], %s2871_s10 }
  0xe2   : > { %1985 = dma.hbm_to_vmem [thread:$0]  (!%p3425_p12), %s2977_s17, 64, %s518_s28, %s3426_s3  }
  0xe3   : > { %s3004_s29 = scalar_lea.hbm %s3318_s4, %s3427_s20  ;;  %s556_s19 = sshll.u32 %s549_s16, 4  ;;  %s3007_s19 = int_to_ptr.vmem [resolvable:$true] %s556_s19 }
  0xe4   : > { %s2306_s13 = scalar_lea.hbm %s3004_s29, 768  ;;  %p3428_p8 = scmp.ne.s32.totalorder %s3417_s7, 0 }
  0xe5   : > { %p2307_p4 = scmp.ne.s32.totalorder %s3004_s29, %s2306_s13  ;;  %s2311_s1 = scalar_lea.hbm %s3318_s4, 1536 }
  0xe6   : > { %p2312_p2 = scmp.lt.u32.totalorder %s3004_s29, %s3318_s4  ;;  %p2313_p7 = scmp.lt.u32.totalorder %s2311_s1, %s2306_s13 }
  0xe7   : > { %p2309_p13 = pnand %p2307_p4, %p3428_p8  ;;  %p2315_p3 = scmp.lt.u32.totalorder %s2306_s13, %s3004_s29 }
  0xe8   : > { %p2314_p11 = por %p2313_p7, %p2312_p2 }
  0xe9   : > { %p2310_p5 = pneg %p2309_p13 }
  0xea   : > { %p2316_p10 = por %p2315_p3, %p2314_p11 }
  0xec   : > { %p2317_p6 = pnand %p2316_p10, %p2310_p5 }
  0xee   : > { %2320 = shalt.err (!%p2317_p6)
}
  0xef   : > { %s2321_s10 = scalar_lea.vmem %s3007_s19, 768  ;;  %s2550_s9 = smov [#allocation11]  }
  0xf0   : > { %p2322_p0 = scmp.ne.s32.totalorder %s3007_s19, %s2321_s10  ;;  %s2326_s30 = sshll.u32 %s2550_s9, 4  ;;  %s2327_s30 = int_to_ptr.vmem [resolvable:$false] %s2326_s30 }
  0xf1   : > { %s2328_s23 = scalar_lea.vmem %s2327_s30, 1536  ;;  %p2329_p12 = scmp.lt.s32.totalorder %s3007_s19, %s2327_s30 }
  0xf2   : > { %p2324_p1 = pnand %p2322_p0, %p3428_p8  ;;  %p2330_p4 = scmp.lt.s32.totalorder %s2328_s23, %s2321_s10 }
  0xf4   : > { %p2325_p9 = pneg %p2324_p1  ;;  %p2331_p13 = por %p2330_p4, %p2329_p12 }
  0xf6   : > { %p2332_p2 = pnand %p2331_p13, %p2325_p9 }
  0xf8   : > { %2335 = shalt.err (!%p2332_p2)
}
  0xf9   : > { %p3429_p5 = scmp.ne.s32.totalorder %s3415_s22, 0  ;;  %s3430_s3 = scalar_lea.sflag [#allocation10], %s2819_s14 }
  0xfa   : > { %s1757_s20 = sshll.u32 %s2532_s21, 4  ;;  %s3431_s13 = sand.u32 1, %s2508_s15  }
  0xfb   : > { %1991 = dma.hbm_to_vmem [thread:$0]  (!%p3429_p5), %s3004_s29, 768, %s3007_s19, %s3430_s3, %s2546_s25, %s2546_s25, %s2547_s5  }
  0xfc   : > { %s3039_s16 = scalar_lea.hbm %s3320_s6, %s1757_s20  ;;  %s575_s17 = scalar_lea.vmem [#allocation12], %s3431_s13 }
  0xfd   : > { %s582_s28 = sshll.u32 %s575_s17, 4  ;;  %s573_s1 = scalar_lea.sflag [#allocation13], %s2819_s14  ;;  %s583_s28 = int_to_ptr.vmem [resolvable:$true] %s582_s28 }
  0xfe   : > { %s2336_s24 = scalar_lea.hbm %s3039_s16, 16  ;;  %s2341_s29 = scalar_lea.hbm %s3320_s6, 32 }
  0xff   : > { %p2337_p7 = scmp.ne.s32.totalorder %s3039_s16, %s2336_s24  ;;  %p2342_p10 = scmp.lt.u32.totalorder %s3039_s16, %s3320_s6 }
 0x100   : > { %p2343_p6 = scmp.lt.u32.totalorder %s2341_s29, %s2336_s24  ;;  %p2345_p1 = scmp.lt.u32.totalorder %s2336_s24, %s3039_s16 }
 0x101   : > { %p2339_p11 = pnand %p2337_p7, %p3428_p8 }
 0x102   : > { %p2344_p0 = por %p2343_p6, %p2342_p10 }
 0x103   : > { %p2340_p3 = pneg %p2339_p11 }
 0x104   : > { %p2346_p9 = por %p2345_p1, %p2344_p0 }
 0x106   : > { %p2347_p12 = pnand %p2346_p9, %p2340_p3 }
 0x108   : > { %2350 = shalt.err (!%p2347_p12)
}
 0x109   : > { %s2351_s14 = scalar_lea.vmem %s583_s28, 16  ;;  %s2551_s10 = smov [#allocation12]  }
 0x10a   : > { %p2352_p4 = scmp.ne.s32.totalorder %s583_s28, %s2351_s14  ;;  %s2356_s9 = sshll.u32 %s2551_s10, 4  ;;  %s2357_s9 = int_to_ptr.vmem [resolvable:$false] %s2356_s9 }
 0x10b   : > { %s2358_s30 = scalar_lea.vmem %s2357_s9, 32  ;;  %p2359_p7 = scmp.lt.s32.totalorder %s583_s28, %s2357_s9 }
 0x10c   : > { %p2354_p13 = pnand %p2352_p4, %p3428_p8  ;;  %p2360_p11 = scmp.lt.s32.totalorder %s2358_s30, %s2351_s14 }
 0x10e   : > { %p2355_p2 = pneg %p2354_p13  ;;  %p2361_p5 = por %p2360_p11, %p2359_p7 }
 0x110   : > { %p2362_p6 = pnand %p2361_p5, %p2355_p2 }
 0x112   : > { %2365 = shalt.err (!%p2362_p6)
}
 0x113   : > { %p3432_p10 = scmp.ne.s32.totalorder %s3415_s22, 0  ;;  %p3433_p3 = scmp.ne.s32.totalorder %s3392_s26, 0 }
 0x114   : > { %s3434_s23 = sld [smem:[#allocation30_spill]] (!%p3433_p3)  ;;  %s3435_s7 = sld [smem:[#allocation38_spill]] (!%p3433_p3) }
 0x115   : > { %1994 = dma.hbm_to_vmem [thread:$0]  (!%p3432_p10), %s3039_s16, 16, %s583_s28, %s573_s1  }
 0x116   : > { %591 = sbr.rel (%p3433_p3) target bundleno = 2060 (0x80c), region = 72 }
 0x11a   : > { %s3064_s3 = sand.u32 (!%p3433_p3), 1, %s3434_s23   ;;  %p3436_p8 = scmp.ne.s32.totalorder (!%p3433_p3), %s3435_s7, 0 }
 0x11b   : > { %s3067_s20 = sshll.u32 (!%p3433_p3), %s3064_s3, 2  ;;  %s594_s12 = scalar_lea.sflag (!%p3433_p3), [#allocation4], %s3064_s3 }
 0x11c   : > { %s597_s8 = scalar_lea.vmem (!%p3433_p3), [#allocation3], %s3067_s20 }
 0x11d   : > { %2467 = dma.done.wait (%p3436_p8), %s594_s12, 64  }
 0x11e   : > { %2469 = vsyncadd (%p3436_p8), %s594_s12, 4294967232  ;;  %s3437_s22 = sld [smem:[#allocation35_spill]]  ;;  %s606_s13 = scalar_lea.vmem [#allocation6], %s3067_s20 }
 0x124   : > { %s602_s26 = sand.u32 1, %s3437_s22  }
 0x125   : > { %s603_s16 = scalar_lea.sflag [#allocation7], %s602_s26 }
 0x126   : > { %2471 = dma.done.wait (%p3436_p8), %s603_s16, 128  }
 0x127   : > { %2473 = vsyncadd (%p3436_p8), %s603_s16, 4294967168  ;;  %s3438_s17 = sld [smem:[#allocation28_spill]]  ;;  %s3439_s28 = sld [smem:[#allocation36_spill]] }
 0x128   : > { %s615_s25 = scalar_lea.vmem [#allocation8], %s3067_s20  ;;  %s621_s5 = scalar_lea.sflag [#allocation10], %s602_s26 }
 0x12d   : > { %s622_s1 = sand.u32 1, %s3438_s17   ;;  %p3440_p5 = scmp.ne.s32.totalorder %s3439_s28, 0 }
 0x12e   : > { %s1944_s24 = smul.u32 48, %s622_s1 }
 0x130   : > { %s3083_s29 = scalar_lea.vmem [#allocation9], %s1944_s24 }
 0x131   : > { %2475 = dma.done.wait (%p3440_p5), %s621_s5, 1536  }
 0x132   : > { %2477 = vsyncadd (%p3440_p5), %s621_s5, 4294965760  ;;  %s3089_s19 = scalar_lea.vmem [#allocation11], %s1944_s24  ;;  %s639_s27 = scalar_lea.sflag [#allocation13], %s602_s26 }
 0x133   : > { %s3091_s14 = scalar_lea.vmem [#allocation12], %s622_s1 }
 0x134   : > { %2479 = dma.done.wait (%p3440_p5), %s639_s27, 16  }
 0x135   : > { %2481 = vsyncadd (%p3440_p5), %s639_s27, 4294967280  ;;  %p3441_p0 = scmp.eq.s32.totalorder %s3437_s22, 0 }
 0x137   : > { %2483 = dma.done.wait (%p3441_p0), [#allocation13], 16   ;;  %p3442_p1 = pmov %p3441_p0 }
 0x138   : > { %p3443_p9 = pmov %p3441_p0 }
 0x139   : > { %2485 = vsyncadd (%p3442_p1), [#allocation13], 4294967280 }
 0x13a   : > { %2487 = dma.done.wait (%p3443_p9), [#allocation16], 256   ;;  %p3444_p12 = pmov %p3441_p0 }
 0x13b   : > { %s3445_s10 = sld [smem:[#allocation31_spill]]  ;;  %s1764_s9 = sshll.u32 %s3064_s3, 3  ;;  %v3114_v0 = vld [vmem:[%s597_s8] sm:$0xf] }
 0x13c   : > { %2489 = vsyncadd (%p3444_p12), [#allocation16], 4294967040  ;;  %s3446_s12 = sld [smem:[#allocation46_spill]]  ;;  %s3116_s16 = scalar_lea.vmem [#allocation17], %s1764_s9 }
 0x13d   : > { %s725_s17 = scalar_lea.vmem [#allocation18], %s3067_s20 }
 0x141   : > { %p726_p4 = scmp.lt.s32.totalorder %s3445_s10, 1  ;;  %p1766_p13 = scmp.ne.s32.totalorder %s3445_s10, 0 }
 0x142   : > { %s3447_s1 = sld [smem:[#allocation47_spill]] (!%p1766_p13)  ;;  %v2552_v2 = vmov (!%p1766_p13), 0.0   ;;  %vm2553_vm0 = vmmov (!%p1766_p13), 0   ;;  %vm758_vm1 = vcmask (!%p1766_p13), 261120   ;;  %v1767_v4 = vld [vmem:[#allocation14] ss:$0 sm:$0xff] (!%p1766_p13) }
 0x143   : > { %s3108_s30 = scalar_select %p726_p4, %s3445_s10, 1 }
 0x144   : > { %734 = sbr.rel (%p1766_p13) target bundleno = 551 (0x227), region = 108  ;;  %1856 = vmatprep.subr.bf16.mxu0 (!%p1766_p13), %v2552_v2  ;;  %1860 = vmatprep.mubr.msk.bf16.mxu0 (!%p1766_p13), %vm2553_vm0, %v2552_v2 }
 0x145   : > { %s728_s26 = scalar_lea.vmem %s3446_s12, %s3108_s30 }
 0x148   : > { %v2104_v1 = vld [vmem:[%s3447_s1] sm:$0xff] (!%p1766_p13)   ;;  %v2105_v3 = vld [vmem:[%s3447_s1 + $0x8] sm:$0xff] (!%p1766_p13)  }
 0x149   : > { %1857 = vmatpush3.bf16.msra.mxu0 (!%p1766_p13), %v2104_v1 }
 0x14a   : > { %1858 = vmatprep.subr.bf16.mxu0 (!%p1766_p13), %v2552_v2 }
 0x14d   : > { %1859 = vmatpush3.bf16.msra.mxu0 %v2105_v3 }
 0x150   : > { %1861 = vmatmul.mubr.msk.bf16.vlgmr.msra.gmra.mrb[0].mxu0 %vm758_vm1, %v3114_v0 }
 0x223   : > { %v796_v5 = vpop.f32.mrb[0].mxu0 }
 0x224   : > { %v797_v6 = vadd.f32 %v1767_v4, %v796_v5  ;;  %v1862_v7 = vpop.f32.mrb[1].mxu0 }
 0x225   : > { %v799_v8 = vpop.f32.mrb[2].mxu0 }
 0x226   : > { %802 = vst.msk [vmem:[#allocation2] sm:$0xff] %vm758_vm1, %v797_v6  ;;  %v1863_v9 = vpop.f32.mrb[3].mxu0 }
 0x227 PF: > { %v2106_v10 = vld [vmem:[%s3083_s29 + $0x10] sm:$0xff]   ;;  %v804_v11 = vlaneseq  ;;  %v2554_v12 = vmov 0.0   ;;  %v2107_v13 = vld [vmem:[%s3083_s29 + $0x20] sm:$0xff]   ;;  %v2108_v14 = vld [vmem:[%s3083_s29 + $0x18] sm:$0xff]   ;;  %vm2555_vm2 = vmmov 0   ;;  %vm852_vm4 = vcmask 261120  }
 0x228   : > { %1864 = vmatprep.subr.bf16.mxu0 %v2554_v12  ;;  %1872 = vmatprep.subr.bf16.mxu1 %v2554_v12  ;;  %v2109_v16 = vld [vmem:[%s3083_s29 + $0x28] sm:$0xff]   ;;  %v2110_v21 = vld [vmem:[%s3089_s19 + $0x10] sm:$0xff]   ;;  %v2111_v23 = vld [vmem:[%s3089_s19 + $0x20] sm:$0xff]   ;;  %s3451_s30 = sld [smem:[#allocation50_spill]]  ;;  %vm1324_vm6 = vcmask 64512   ;;  %vm1341_vm7 = vcmask 1043456  }
 0x229   : > { %1865 = vmatpush3.bf16.msra.mxu0 %v2106_v10  ;;  %1868 = vmatprep.mubr.msk.bf16.mxu0 %vm2555_vm2, %v2554_v12  ;;  %v805_v15 = vshrl.u32 %v804_v11, 7  ;;  %v2112_v25 = vld [vmem:[%s3089_s19 + $0x18] sm:$0xff]   ;;  %v2113_v26 = vld [vmem:[%s3089_s19 + $0x28] sm:$0xff]   ;;  %v2114_v27 = vld [vmem:[%s3083_s29] sm:$0xff]   ;;  %s3453_s28 = sld [smem:[#allocation31_spill]] }
 0x22a   : > { %1873 = vmatpush3.bf16.msra.mxu1 %v2107_v13  ;;  %1866 = vmatprep.subr.bf16.mxu0 %v2554_v12  ;;  %v2115_v28 = vld [vmem:[%s3089_s19] sm:$0xff]   ;;  %v2116_v30 = vld [vmem:[%s3083_s29 + $0x8] sm:$0xff]  }
 0x22b   : > { %1874 = vmatprep.subr.bf16.mxu1 %v2554_v12  ;;  %1876 = vmatprep.mubr.msk.bf16.mxu1 %vm2555_vm2, %v2554_v12  ;;  %v810_v18 = vand.u32 7, %v805_v15  ;;  %v2117_v31 = vld [vmem:[%s3089_s19 + $0x8] sm:$0xff]   ;;  %s3448_s19 = sld [smem:[#allocation49_spill]]  ;;  %v1806_v56 = vld [vmem:[%s3091_s14] ss:$0 sm:$0xff]  ;;  %v1273_v15 = vunpack.c.l.bf16 %v3114_v0 }
 0x22c   : > { %v1805_v6 = vld [vmem:[%s728_s26] ss:$0 sm:$0xff]  ;;  %v1277_v11 = vld [vmem:[%s606_s13] sm:$0xf]  ;;  %s3452_s26 = sld [smem:[#allocation51_spill]] }
 0x22d   : > { %v3139_v17 = vld [vmem:[#allocation2] sm:$0xff]  ;;  %1867 = vmatpush3.bf16.msra.mxu0 %v2108_v14  ;;  %vm830_vm3 = vcmp.ge.s32.totalorder %v810_v18, 1  ;;  %vm1061_vm5 = vcmp.ge.s32.totalorder %v810_v18, 2  ;;  %v1282_v13 = vsel %vm852_vm4, %v1277_v11, 0 }
 0x22e   : > { %v829_v19 = vrot.slane %v3139_v17, 7  ;;  %v818_v20 = vpack.c.bf16 %v3139_v17, %v3139_v17  ;;  %1875 = vmatpush3.bf16.msra.mxu1 %v2109_v16  ;;  %1880 = vmatprep.subr.bf16.mxu0 %v2554_v12  ;;  %v1060_v29 = vrot.slane %v3139_v17, 6  ;;  %v1808_v14 = vld [vmem:[%s3451_s30] ss:$0 sm:$0xff] }
 0x22f   : > { %1888 = vmatprep.subr.bf16.mxu1 %v2554_v12  ;;  %p1818_p2 = scmp.ne.s32.totalorder %s3453_s28, 1 }
 0x230   : > { %v833_v22 = vsel %vm830_vm3, %v829_v19, 0.0  ;;  %v1064_v32 = vsel %vm1061_vm5, %v1060_v29, 0.0  ;;  %vm1462_vm8 = vcmask (!%p1818_p2), 60416  }
 0x231   : > { %v834_v24 = vpack.c.bf16 %v833_v22, %v833_v22  ;;  %1877 = vmatmul.mubr.msk.bf16.vlgmr.msra.gmra.mrb[0].mxu1 %vm852_vm4, %v818_v20  ;;  %v1065_v33 = vpack.c.bf16 %v1064_v32, %v1064_v32  ;;  %s3449_s27 = smov %s3448_s19  ;;  %v2118_v34 = vld [vmem:[%s3448_s19] sm:$0xff]  }
 0x232   : > { %1889 = vmatpush3.bf16.msra.mxu1 %v2111_v23  ;;  %1892 = vmatprep.mubr.msk.bf16.mxu1 %vm2555_vm2, %v2554_v12  ;;  %v2119_v35 = vld [vmem:[%s3449_s27 + $0x8] sm:$0xff]  }
 0x233   : > { %1869 = vmatmul.mubr.msk.bf16.vlgmr.msra.gmra.mrb[0].mxu0 %vm852_vm4, %v834_v24  ;;  %1890 = vmatprep.subr.bf16.mxu1 %v2554_v12 }
 0x234   : > { %1881 = vmatpush3.bf16.msra.mxu0 %v2110_v21  ;;  %1884 = vmatprep.mubr.msk.bf16.mxu0 %vm2555_vm2, %v2554_v12 }
 0x235   : > { %1882 = vmatprep.subr.bf16.mxu0 %v2554_v12 }
 0x236   : > { %1891 = vmatpush3.bf16.msra.mxu1 %v2113_v26 }
 0x237   : > { %1904 = vmatprep.subr.bf16.mxu1 %v2554_v12 }
 0x238   : > { %1883 = vmatpush3.bf16.msra.mxu0 %v2112_v25 }
 0x239   : > { %1896 = vmatprep.subr.bf16.mxu0 %v2554_v12  ;;  %1893 = vmatmul.mubr.msk.bf16.vlgmr.msra.gmra.mrb[4].mxu1 %vm852_vm4, %v818_v20 }
 0x23a   : > { %1905 = vmatpush3.bf16.msra.mxu1 %v2115_v28  ;;  %1908 = vmatprep.mubr.msk.bf16.mxu1 %vm2555_vm2, %v2554_v12 }
 0x23b   : > { %1885 = vmatmul.mubr.msk.bf16.vlgmr.msra.gmra.mrb[4].mxu0 %vm852_vm4, %v834_v24  ;;  %1906 = vmatprep.subr.bf16.mxu1 %v2554_v12 }
 0x23c   : > { %1897 = vmatpush3.bf16.msra.mxu0 %v2114_v27  ;;  %1900 = vmatprep.mubr.msk.bf16.mxu0 %vm2555_vm2, %v2554_v12 }
 0x23d   : > { %1898 = vmatprep.subr.bf16.mxu0 %v2554_v12 }
 0x23e   : > { %1907 = vmatpush3.bf16.msra.mxu1 %v2117_v31 }
 0x23f   : > { %1920 = vmatprep.subr.bf16.mxu1 %v2554_v12 }
 0x240   : > { %1899 = vmatpush3.bf16.msra.mxu0 %v2116_v30 }
 0x241   : > { %1912 = vmatprep.subr.bf16.mxu0 %v2554_v12  ;;  %1909 = vmatmul.mubr.msk.bf16.vlgmr.msra.gmra.mrb[8].mxu1 %vm852_vm4, %v1065_v33 }
 0x242   : > { %1922 = vmatprep.mubr.msk.bf16.mxu1 %vm2555_vm2, %v2554_v12 }
 0x243   : > { %1901 = vmatmul.mubr.msk.bf16.vlgmr.msra.gmra.mrb[8].mxu0 %vm852_vm4, %v1065_v33 }
 0x244   : > { %1916 = vmatprep.mubr.msk.bf16.mxu0 %vm2555_vm2, %v2554_v12  ;;  %1913 = vmatpush3.bf16.msra.mxu0 %v2118_v34  ;;  %v1337_v34 = vld [vmem:[%s615_s25] sm:$0xf] }
 0x245   : > { %1914 = vmatprep.subr.bf16.mxu0 %v2554_v12 }
 0x247   : > { %1921 = vmatpush3.bf16.xpose.msra.mxu1 %v1282_v13 }
 0x248   : > { %1915 = vmatpush3.bf16.msra.mxu0 %v2119_v35  ;;  %1932 = vmatprep.subr.bf16.mxu1 %v2554_v12  ;;  %v1343_v35 = vsel %vm1341_vm7, %v1337_v34, 0 }
 0x249   : > { %1926 = vmatprep.subr.bf16.mxu0 %v2554_v12 }
 0x304   : > { %v945_v36 = vpop.f32.mrb[0].mxu1 }
 0x305   : > { %v1878_v39 = vpop.f32.mrb[1].mxu1 }
 0x306   : > { %v890_v37 = vpop.f32.mrb[0].mxu0  ;;  %v948_v41 = vpop.f32.mrb[2].mxu1 }
 0x307   : > { %v946_v38 = vadd.f32 %v945_v36, %v890_v37  ;;  %v1870_v40 = vpop.f32.mrb[1].mxu0  ;;  %v1879_v43 = vpop.f32.mrb[3].mxu1  ;;  %v2120_v36 = vld [vmem:[#allocation15] sm:$0xff]   ;;  %v2121_v41 = vld [vmem:[#allocation15 + $0x8] sm:$0xff]  }
 0x308   : > { %v893_v42 = vpop.f32.mrb[2].mxu0 }
 0x309   : > { %v1871_v44 = vpop.f32.mrb[3].mxu0 }
 0x30c   : > { %v1054_v45 = vpop.f32.mrb[4].mxu1 }
 0x30d   : > { %v1894_v48 = vpop.f32.mrb[5].mxu1 }
 0x30e   : > { %v1002_v46 = vpop.f32.mrb[4].mxu0  ;;  %v1057_v50 = vpop.f32.mrb[6].mxu1 }
 0x30f   : > { %v1055_v47 = vadd.f32 %v1054_v45, %v1002_v46  ;;  %v1886_v49 = vpop.f32.mrb[5].mxu0  ;;  %v1895_v52 = vpop.f32.mrb[7].mxu1 }
 0x310   : > { %v1005_v51 = vpop.f32.mrb[6].mxu0 }
 0x311   : > { %v1887_v53 = vpop.f32.mrb[7].mxu0 }
 0x314   : > { %v1176_v55 = vpop.f32.mrb[8].mxu1 }
 0x315   : > { %v1182_v58 = vadd.f32 %v1176_v55, %v1055_v47  ;;  %v1910_v59 = vpop.f32.mrb[9].mxu1 }
 0x316   : > { %v1119_v54 = vpop.f32.mrb[8].mxu0  ;;  %v1179_v61 = vpop.f32.mrb[10].mxu1 }
 0x317   : > { %v1125_v57 = vadd.f32 %v1119_v54, %v946_v38  ;;  %v1902_v60 = vpop.f32.mrb[9].mxu0  ;;  %v1198_v63 = vadd.f32 %v1806_v56, %v1182_v58  ;;  %v1911_v1 = vpop.f32.mrb[11].mxu1 }
 0x318   : > { %v1122_v62 = vpop.f32.mrb[10].mxu0 }
 0x319   : > { %v1903_v2 = vpop.f32.mrb[11].mxu0  ;;  %v1807_v3 = vmul.f32 -1.442695, %v1198_v63  ;;  %v1190_v7 = vadd.f32 %v1805_v6, %v1125_v57 }
 0x31b   : > { %2122 = vpow2.f32 %v1807_v3 }
 0x325   : > { %v2123_v4 = vpop.eup %2122 }
 0x326   : > { %v1202_v5 = vadd.f32 1.0, %v2123_v4 }
 0x328   : > { %2124 = vrcp.f32 %v1202_v5 }
 0x332   : > { %v2125_v8 = vpop.eup %2124 }
 0x333   : > { %v1205_v9 = vmul.f32 %v2125_v8, %v1190_v7 }
 0x335   : > { %v1206_v10 = vpack.c.bf16 %v1205_v9, %v1205_v9 }
 0x337   : > { %1917 = vmatmul.mubr.msk.bf16.vlgmr.msra.gmra.mrb[12].mxu0 %vm852_vm4, %v1206_v10 }
 0x338   : > { %1928 = vmatprep.mubr.msk.bf16.mxu0 %vm2555_vm2, %v2554_v12  ;;  %1927 = vmatpush3.bf16.msra.mxu0 %v1343_v35 }
 0x40a   : > { %v1267_v16 = vpop.f32.mrb[12].mxu0 }
 0x40b   : > { %v1268_v18 = vadd.f32 %v1808_v14, %v1267_v16  ;;  %v1918_v19 = vpop.f32.mrb[13].mxu0 }
 0x40c   : > { %v1270_v20 = vpop.f32.mrb[14].mxu0 }
 0x40d   : > { %v1274_v21 = vadd.f32 %v1273_v15, %v1268_v18  ;;  %v1919_v22 = vpop.f32.mrb[15].mxu0 }
 0x40f   : > { %v1275_v23 = vmul.f32 0.70710677, %v1274_v21 }
 0x411   : > { %v1276_v24 = vpack.c.bf16 %v1275_v23, %v1275_v23 }
 0x413   : > { %1923 = vmatmul.mubr.msk.bf16.vlgmr.msra.gmra.mrb[12].mxu1 %vm852_vm4, %v1276_v24 }
 0x414   : > { %1936 = vmatprep.mubr.msk.bf16.mxu1 %vm2555_vm2, %v2554_v12  ;;  %1933 = vmatpush3.bf16.msra.mxu1 %v2120_v36 }
 0x415   : > { %1934 = vmatprep.subr.bf16.mxu1 %v2554_v12  ;;  %v1814_v12 = vld [vmem:[%s3452_s26] ss:$0 sm:$0xff] }
 0x418   : > { %1935 = vmatpush3.bf16.msra.mxu1 %v2121_v41 }
 0x4e6   : > { %v1318_v25 = vpop.f32.mrb[12].mxu1 }
 0x4e7   : > { %v1924_v26 = vpop.f32.mrb[13].mxu1  ;;  %v1325_v27 = vsel %vm1324_vm6, %v1318_v25, -inf }
 0x4e8   : > { %1326 = vmax.xlane.f32.xlu0 %v1325_v27  ;;  %v1321_v0 = vpop.f32.mrb[14].mxu1 }
 0x4e9   : > { %v1925_v28 = vpop.f32.mrb[15].mxu1 }
 0x575   : > { %v1327_v29 = vpop.xlane.xlu0 %1326 }
 0x576   : > { %v1328_v30 = vsub.f32 %v1318_v25, %v1327_v29 }
 0x578   : > { %v1329_v31 = vmul.f32 1.442695, %v1328_v30 }
 0x57a   : > { %2126 = vpow2.f32 %v1329_v31 }
 0x584   : > { %v2127_v32 = vpop.eup %2126 }
 0x585   : > { %v1331_v33 = vsel %vm1324_vm6, %v2127_v32, 0.0 }
 0x586   : > { %1332 = vadd.xlane.f32.xlu0 %v1331_v33 }
 0x613   : > { %v1333_v37 = vpop.xlane.xlu0 %1332 }
 0x614   : > { %2128 = vrcp.f32 %v1333_v37 }
 0x61e   : > { %v2129_v38 = vpop.eup %2128 }
 0x61f   : > { %v1335_v39 = vmul.f32 %v2129_v38, %v2127_v32 }
 0x621   : > { %v1336_v40 = vpack.c.bf16 %v1335_v39, %v1335_v39 }
 0x623   : > { %1929 = vmatmul.mubr.msk.bf16.vlgmr.msra.gmra.mrb[16].mxu0 %vm1324_vm6, %v1336_v40  ;;  %1463 = vst.msk [vmem:[%s725_s17] sm:$0xf] (!%p1818_p2), %vm1462_vm8, %v1336_v40 }
 0x6f6   : > { %v1379_v42 = vpop.f32.mrb[16].mxu0 }
 0x6f7   : > { %v1385_v43 = vpack.c.bf16 %v1379_v42, %v1379_v42  ;;  %v1930_v44 = vpop.f32.mrb[17].mxu0 }
 0x6f8   : > { %v1382_v45 = vpop.f32.mrb[18].mxu0 }
 0x6f9   : > { %v1931_v46 = vpop.f32.mrb[19].mxu0  ;;  %1937 = vmatmul.mubr.msk.bf16.vlgmr.msra.gmra.mrb[16].mxu1 %vm852_vm4, %v1385_v43 }
 0x7cc   : > { %v1446_v47 = vpop.f32.mrb[16].mxu1 }
 0x7cd   : > { %v1447_v48 = vadd.f32 %v1814_v12, %v1446_v47  ;;  %v1938_v49 = vpop.f32.mrb[17].mxu1 }
 0x7ce   : > { %v1449_v50 = vpop.f32.mrb[18].mxu1 }
 0x7cf   : > { %v1452_v51 = vadd.f32 %v1447_v48, %v1205_v9  ;;  %v1939_v52 = vpop.f32.mrb[19].mxu1 }
 0x7d1   : > { %v1453_v53 = vmul.f32 0.70710677, %v1452_v51  ;;  %1460 = sbr.rel (%p1818_p2) target bundleno = 2008 (0x7d8), region = 112 }
 0x7d3   : > { %v1454_v54 = vadd.f32 %v1453_v53, %v3139_v17 }
 0x7d5   : > { %v1455_v55 = vmul.f32 0.70710677, %v1454_v54 }
 0x7d7   : > { %1456 = vst.msk [vmem:[#allocation2] sm:$0xff] %vm852_vm4, %v1455_v55  ;;  %1461 = vst.msk [vmem:[%s3116_s16] sm:$0xff] (!%p1818_p2), %vm852_vm4, %v1455_v55 }
 0x7d8 PF: > { %s3454_s24 = sld [smem:[#allocation32_spill]]  ;;  %s3455_s5 = sld [smem:[#allocation40_spill]] }
 0x7d9   : > { %s3456_s10 = sld [smem:[#allocation52_spill]]  ;;  %s1483_s23 = sshll.u32 %s3116_s16, 4  ;;  %s1484_s23 = int_to_ptr.vmem [resolvable:$true] %s1483_s23 }
 0x7da   : > { %s1465_s7 = scalar_lea.sflag [#allocation5], %s3064_s3  ;;  %s2366_s12 = scalar_lea.vmem %s1484_s23, 128 }
 0x7db   : > { %p2367_p7 = scmp.ne.s32.totalorder %s1484_s23, %s2366_s12  ;;  %s2556_s14 = smov [#allocation17]  }
 0x7dc   : > { %s2370_s22 = sshll.u32 %s2556_s14, 4  ;;  %s2371_s22 = int_to_ptr.vmem [resolvable:$false] %s2370_s22 }
 0x7dd   : > { %s2372_s30 = scalar_lea.vmem %s2371_s22, 256  ;;  %p2373_p3 = scmp.lt.s32.totalorder %s1484_s23, %s2371_s22 }
 0x7de   : > { %s1821_s8 = sshll.u32 %s3454_s24, 7  ;;  %p3457_p11 = scmp.ne.s32.totalorder %s3455_s5, 0 }
 0x7df   : > { %s3230_s9 = scalar_lea.hbm %s3456_s10, %s1821_s8  ;;  %p2374_p8 = scmp.lt.s32.totalorder %s2372_s30, %s2366_s12 }
 0x7e0   : > { %p2368_p6 = pnand %p2367_p7, %p3457_p11 }
 0x7e1   : > { %p2375_p5 = por %p2374_p8, %p2373_p3 }
 0x7e2   : > { %p2369_p10 = pneg %p2368_p6 }
 0x7e4   : > { %p2376_p0 = pnand %p2375_p5, %p2369_p10 }
 0x7e6   : > { %2379 = shalt.err (!%p2376_p0)
}
 0x7e7   : > { %s2380_s16 = scalar_lea.hbm %s3230_s9, 128  ;;  %s2384_s26 = scalar_lea.hbm %s3456_s10, 256 }
 0x7e8   : > { %p2381_p1 = scmp.ne.s32.totalorder %s3230_s9, %s2380_s16  ;;  %p2385_p4 = scmp.lt.u32.totalorder %s3230_s9, %s3456_s10 }
 0x7e9   : > { %p2386_p13 = scmp.lt.u32.totalorder %s2384_s26, %s2380_s16  ;;  %p2388_p7 = scmp.lt.u32.totalorder %s2380_s16, %s3230_s9 }
 0x7ea   : > { %p2382_p9 = pnand %p2381_p1, %p3457_p11 }
 0x7eb   : > { %p2387_p2 = por %p2386_p13, %p2385_p4 }
 0x7ec   : > { %p2383_p12 = pneg %p2382_p9 }
 0x7ed   : > { %p2389_p6 = por %p2388_p7, %p2387_p2 }
 0x7ef   : > { %p2390_p10 = pnand %p2389_p6, %p2383_p12 }
 0x7f1   : > { %2393 = shalt.err (!%p2390_p10)
}
 0x7f2   : > { %1965 = dma.vmem_to_hbm [thread:$0]  (%p3457_p11), %s1484_s23, 128, %s3230_s9, %s1465_s7  }
 0x7f3   : > { %s1822_s29 = sshll.u32 %s3454_s24, 6  ;;  %s1496_s19 = sshll.u32 %s725_s17, 4  ;;  %s1497_s19 = int_to_ptr.vmem [resolvable:$true] %s1496_s19 }
 0x7f4   : > { %s3458_s22 = sld [smem:[#allocation53_spill]]  ;;  %s1470_s16 = scalar_lea.sflag [#allocation19], %s3064_s3 }
 0x7f5   : > { %s2394_s25 = scalar_lea.vmem %s1497_s19, 64  ;;  %s2557_s26 = smov [#allocation18]  }
 0x7f6   : > { %p2395_p3 = scmp.ne.s32.totalorder %s1497_s19, %s2394_s25  ;;  %s2398_s28 = sshll.u32 %s2557_s26, 4  ;;  %s2399_s28 = int_to_ptr.vmem [resolvable:$false] %s2398_s28 }
 0x7f7   : > { %s2400_s8 = scalar_lea.vmem %s2399_s28, 128  ;;  %p2401_p0 = scmp.lt.s32.totalorder %s1497_s19, %s2399_s28 }
 0x7f8   : > { %p2396_p8 = pnand %p2395_p3, %p3457_p11  ;;  %p2402_p1 = scmp.lt.s32.totalorder %s2400_s8, %s2394_s25 }
 0x7fa   : > { %s3459_s13 = smov %s3458_s22  ;;  %s3257_s30 = scalar_lea.hbm %s3458_s22, %s1822_s29 }
 0x7fb   : > { %p2397_p5 = pneg %p2396_p8  ;;  %p2403_p9 = por %p2402_p1, %p2401_p0 }
 0x7fd   : > { %p2404_p12 = pnand %p2403_p9, %p2397_p5 }
 0x7ff   : > { %2407 = shalt.err (!%p2404_p12)
}
 0x800   : > { %s2408_s3 = scalar_lea.hbm %s3257_s30, 64  ;;  %s2412_s24 = scalar_lea.hbm %s3459_s13, 128 }
 0x801   : > { %p2409_p4 = scmp.ne.s32.totalorder %s3257_s30, %s2408_s3  ;;  %p2413_p7 = scmp.lt.u32.totalorder %s3257_s30, %s3459_s13 }
 0x802   : > { %p2414_p6 = scmp.lt.u32.totalorder %s2412_s24, %s2408_s3  ;;  %p2416_p3 = scmp.lt.u32.totalorder %s2408_s3, %s3257_s30 }
 0x803   : > { %p2410_p13 = pnand %p2409_p4, %p3457_p11 }
 0x804   : > { %p2415_p10 = por %p2414_p6, %p2413_p7 }
 0x805   : > { %p2411_p2 = pneg %p2410_p13 }
 0x806   : > { %p2417_p8 = por %p2416_p3, %p2415_p10 }
 0x808   : > { %p2418_p5 = pnand %p2417_p8, %p2411_p2 }
 0x80a   : > { %2421 = shalt.err (!%p2418_p5)
}
 0x80b   : > { %1966 = dma.vmem_to_hbm [thread:$0]  (%p3457_p11), %s1497_s19, 64, %s3257_s30, %s1470_s16  }
 0x80c PF: > { %s3460_s7 = sld [smem:[#allocation34_spill]]  ;;  %s3461_s29 = sld [smem:[#allocation29_spill]] }
 0x80d   : > { %s3462_s12 = sld [smem:[#allocation43_spill]] }
 0x812   : > { %p2007_p0 = scmp.ge.s32.totalorder %s3460_s7, 2  ;;  %s1508_s14 = sand.u32 1, %s3461_s29  }
 0x813   : > { %p3463_p1 = scmp.ne.s32.totalorder %s3462_s12, 0  ;;  %s1509_s22 = scalar_lea.sflag [#allocation5], %s1508_s14 }
 0x815   : > { %p1996_p9 = pnand %p2007_p0, %p3463_p1 }
 0x817   : > { %2491 = dma.done.wait (!%p1996_p9), %s1509_s22, 128  }
 0x818   : > { %2493 = vsyncadd (!%p1996_p9), %s1509_s22, 4294967168  ;;  %s1518_s25 = scalar_lea.sflag [#allocation19], %s1508_s14 }
 0x819   : > { %2495 = dma.done.wait (!%p1996_p9), %s1518_s25, 64  }
 0x81a   : > { %2497 = vsyncadd (!%p1996_p9), %s1518_s25, 4294967232  ;;  %s44_s23 = sadd.s32 1, %s3460_s7   ;;  %s3464_s29 = sld [smem:[#allocation28_spill]] }
 0x81b   : > { %p41_p12 = scmp.ge.s32.totalorder %s44_s23, 6   ;;  %s3465_s5 = sld [smem:[#allocation41_spill]] }
 0x81c   : > { %s3466_s16 = sld [smem:[#allocation30_spill]]  ;;  %s3467_s19 = sld [smem:[#allocation42_spill]] }
 0x81d   : > { %s3468_s20 = sld [smem:[#allocation33_spill]]  ;;  %s3469_s26 = sld [smem:[#allocation37_spill]] }
 0x81e   : > { %s3470_s22 = sld [smem:[#allocation39_spill]]  ;;  %s3471_s30 = smov %s2508_s15 }
 0x81f   : > { %s3473_s17 = smov %s2520_s18  ;;  %43 = sbr.rel (!%p41_p12) target bundleno = 29 (0x1d), region = 218 }
 0x821   : > { %s3472_s15 = smov %s3465_s5 }
 0x822   : > { %s3474_s18 = smov %s3467_s19  ;;  %s3475_s19 = smov %s2532_s21 }
 0x823   : > { %s3476_s21 = smov %s3469_s26 }
 0x826   :  { %1523 = vsyncpa [#allocation4], 1 }
 0x827   :  { %1525 = vsyncpa [#allocation4 + $0x1], 1 }
 0x828   :  { %1526 = vsyncpa [#allocation7], 1 }
 0x829   :  { %1528 = vsyncpa [#allocation7 + $0x1], 1 }
 0x82a   :  { %1529 = vsyncpa [#allocation10], 1 }
 0x82b   :  { %1531 = vsyncpa [#allocation10 + $0x1], 1 }
 0x82c   :  { %1532 = vsyncpa [#allocation13], 1 }
 0x82d   :  { %1534 = vsyncpa [#allocation13 + $0x1], 1 }
 0x82e   :  { %1535 = vsyncpa [#allocation16], 1 }
 0x82f   :  { %1536 = vsyncpa [#allocation5], 1 }
 0x830   :  { %1538 = vsyncpa [#allocation5 + $0x1], 1 }
 0x831   :  { %1539 = vsyncpa [#allocation19], 1 }
 0x832   :  { %1541 = vsyncpa [#allocation19 + $0x1], 1 }

</bundles_post_ra>
